<compile_context>
chip_gen: v7x
topology: tpu7x:2x2x1
jax: 0.10.0
libtpu: 0.0.40
codegen_flags: <defaults>
</compile_context>

<pallas_src>
from functools import partial

import jax
import jax.numpy as jnp
from jax.experimental import pallas as pl
from jax.experimental.pallas import tpu as pltpu


# ----------------------------------------------------------------------------
# Fused kernel (transposed layout):
#   lin_in -> (spmm -> FourierKAN) x (num_layers-1) -> lin_out -> log_softmax
# ----------------------------------------------------------------------------
def _fused_kangnn_kernel(xT_ref, adjT_ref, w_inT_ref, *rest, grid_feat, num_kan):
    # rest = (kan_w_0, ..., kan_w_{num_kan-1}, w_outT_ref, o_ref)
    kan_refs = rest[:num_kan]
    w_outT_ref = rest[num_kan]
    o_ref = rest[num_kan + 1]

    G = grid_feat

    if num_kan == 0:
        # No propagation layers: x = lin_in(x) feeds lin_out directly.
        xT = jnp.dot(w_inT_ref[...], xT_ref[...], preferred_element_type=jnp.float32)
    else:
        xT = None

    for layer, w_ref in enumerate(kan_refs):
        if layer == 0:
            # Reassociated first layer: h1^T = W_in^T @ (x_raw^T @ adj^T).
            # The big 128x128 spmm runs with K = in_feat (16) instead of H (32).
            axT = jnp.dot(
                xT_ref[...], adjT_ref[...], preferred_element_type=jnp.float32
            )                                                            # (in, N)
            hT = jnp.dot(w_inT_ref[...], axT, preferred_element_type=jnp.float32)  # (H, N)
        else:
            # h^T = x^T @ adj^T ; adj is re-read from VMEM, not held in vregs.
            hT = jnp.dot(xT, adjT_ref[...], preferred_element_type=jnp.float32)    # (H, N)

        # Fourier features via angle-addition recurrence:
        #   cos((k+1)h) = cos(kh)cos(h) - sin(kh)sin(h)
        #   sin((k+1)h) = sin(kh)cos(h) + cos(kh)sin(h)
        # -> only ONE cos + ONE sin transcendental per layer.  Each harmonic is
        # consumed immediately by a small bf16 matmul against its (H, H)
        # transposed coefficient slice and accumulated in f32 -- no phi scratch,
        # no offset/masked stores.
        c1 = jnp.cos(hT)                                                 # (H, N)
        s1 = jnp.sin(hT)
        ck, sk = c1, s1
        acc = jnp.dot(
            w_ref[0], ck.astype(jnp.bfloat16), preferred_element_type=jnp.float32
        )
        acc = acc + jnp.dot(
            w_ref[1], sk.astype(jnp.bfloat16), preferred_element_type=jnp.float32
        )
        for k in range(1, G):
            ck, sk = ck * c1 - sk * s1, sk * c1 + ck * s1
            acc = acc + jnp.dot(
                w_ref[2 * k], ck.astype(jnp.bfloat16),
                preferred_element_type=jnp.float32,
            )
            acc = acc + jnp.dot(
                w_ref[2 * k + 1], sk.astype(jnp.bfloat16),
                preferred_element_type=jnp.float32,
            )
        xT = acc                                                         # (H, N)

    # lin_out + log_softmax epilogue, lane-dense (classes live on the sublane
    # axis; (out, N) = (8, 128) is exactly one f32 vreg, stored unmasked).
    yT = jnp.dot(w_outT_ref[...], xT, preferred_element_type=jnp.float32)  # (out, N)
    m = jnp.max(yT, axis=0, keepdims=True)
    lse = m + jnp.log(jnp.sum(jnp.exp(yT - m), axis=0, keepdims=True))
    o_ref[...] = (yT - lse).astype(o_ref.dtype)


# ----------------------------------------------------------------------------
# Wrapper (host-side layout plumbing: transposes outside the kernel)
# ----------------------------------------------------------------------------
def kan_gnn_forward(x, adj, params, *, num_layers, grid_feat):
    N, in_feat = x.shape
    w_in = params["w_in"]                         # (in, H) f32
    w_out = params["w_out"]                       # (H, out) f32
    num_kan = num_layers - 1                      # matches self.lins[: num_layers - 1]
    kan_ws = params["kan"][:num_kan]              # each (2*G, H, H) bf16: [2k]=Cc_k^T, [2k+1]=Cs_k^T

    H = w_in.shape[1]
    out_feat = w_out.shape[1]

    # Transposed layout so N=128 sits on the lane axis everywhere.
    xT = x.T                                      # (in, N)
    adjT = adj.T                                  # (N, N)
    w_inT = w_in.T                                # (H, in)
    w_outT = w_out.T                              # (out, H)

    kernel = partial(_fused_kangnn_kernel, grid_feat=grid_feat, num_kan=num_kan)

    in_specs = (
        [
            pl.BlockSpec((in_feat, N), lambda i: (0, 0)),          # x^T
            pl.BlockSpec((N, N), lambda i: (0, 0)),                # adj^T
            pl.BlockSpec((H, in_feat), lambda i: (0, 0)),          # W_in^T
        ]
        + [
            pl.BlockSpec((2 * grid_feat, H, H), lambda i: (0, 0, 0))
            for _ in range(num_kan)
        ]
        + [pl.BlockSpec((out_feat, H), lambda i: (0, 0))]          # W_out^T
    )

    outT = pl.pallas_call(
        kernel,
        out_shape=jax.ShapeDtypeStruct((out_feat, N), x.dtype),
        grid=(1,),                                                 # everything fits in VMEM at N=128
        in_specs=in_specs,
        out_specs=pl.BlockSpec((out_feat, N), lambda i: (0, 0)),
        compiler_params=pltpu.CompilerParams(
            dimension_semantics=("arbitrary",),
        ),
    )(xT, adjT, w_inT, *kan_ws, w_outT)

    # Restore module-facing (N, out) orientation on the host.
    return outT.T


# ----------------------------------------------------------------------------
# Pure-JAX reference (PyTorch math).  emulate_bf16=True mirrors the kernel's
# bf16-input / f32-accumulate MXU path for the KAN contraction so the assert
# can be tight; with emulate_bf16=False it is the exact f32 module math.
# ----------------------------------------------------------------------------
def kan_gnn_reference(x, adj, params, *, num_layers, grid_feat, emulate_bf16=True):
    G = grid_feat
    x = jnp.dot(x, params["w_in"], precision="highest")
    for w_packed in params["kan"][: num_layers - 1]:
        h = jnp.dot(adj, x, precision="highest")
        N, H = h.shape
        k = jnp.arange(1, G + 1, dtype=jnp.float32)                    # (G,)
        hk = h[:, None, :] * k[None, :, None]                          # (N, G, H)
        cos_f = jnp.cos(hk)
        sin_f = jnp.sin(hk)
        if emulate_bf16:
            cos_f = cos_f.astype(jnp.bfloat16).astype(jnp.float32)
            sin_f = sin_f.astype(jnp.bfloat16).astype(jnp.float32)
        w = w_packed.astype(jnp.float32).reshape(G, 2, H, H)           # [k, d, j, i]
        x = (
            jnp.einsum("nki,kji->nj", cos_f, w[:, 0], precision="highest")
            + jnp.einsum("nki,kji->nj", sin_f, w[:, 1], precision="highest")
        )
    y = jnp.dot(x, params["w_out"], precision="highest")
    return jax.nn.log_softmax(y, axis=-1)


# ----------------------------------------------------------------------------
# Main
# ----------------------------------------------------------------------------
if __name__ == "__main__":
    # Small, deterministic problem sizes.
    N = 128          # graph nodes
    in_feat = 16
    hidden_feat = 32
    out_feat = 8
    grid_feat = 4
    num_layers = 3   # module builds 3 KAN layers, uses num_layers - 1 = 2 of them

    key = jax.random.PRNGKey(0)
    k_x, k_adj, k_win, k_kan, k_wout = jax.random.split(key, 5)

    # Node features.
    x = jax.random.normal(k_x, (N, in_feat), dtype=jnp.float32)

    # Dense symmetric adjacency with self loops, row-normalized.
    a = (jax.random.uniform(k_adj, (N, N)) < 0.05).astype(jnp.float32)
    a = jnp.maximum(a, a.T) + jnp.eye(N, dtype=jnp.float32)
    adj = a / jnp.sum(a, axis=1, keepdims=True)

    # Parameters (deterministic synthetic init; shapes follow the module).
    w_in = jax.random.normal(k_win, (in_feat, hidden_feat), dtype=jnp.float32) / jnp.sqrt(
        jnp.float32(in_feat)
    )
    w_out = jax.random.normal(k_wout, (hidden_feat, out_feat), dtype=jnp.float32) / jnp.sqrt(
        jnp.float32(hidden_feat)
    )

    # FourierKAN coefficients: (2, out, in, grid) / (sqrt(in) * sqrt(grid)).
    # For the transposed kernel, harmonic k's cos/sin weights are simply
    # coef[d, :, :, k] (shape (H, H)); pack k-major, cos/sin interleaved, to
    # (2*G, H, H) bf16 so the kernel indexes w_ref[2*k] / w_ref[2*k + 1].
    kan_params = []
    kan_keys = jax.random.split(k_kan, num_layers)
    for kk in kan_keys:
        coef = jax.random.normal(
            kk, (2, hidden_feat, hidden_feat, grid_feat), dtype=jnp.float32
        ) / (jnp.sqrt(jnp.float32(hidden_feat)) * jnp.sqrt(jnp.float32(grid_feat)))
        w_packed = (
            coef.transpose(3, 0, 1, 2)                       # (G, 2, H, H), [k, d, j, i]
            .reshape(2 * grid_feat, hidden_feat, hidden_feat)
            .astype(jnp.bfloat16)
        )
        kan_params.append(w_packed)

    params = {"w_in": w_in, "kan": kan_params, "w_out": w_out}

    out = kan_gnn_forward(x, adj, params, num_layers=num_layers, grid_feat=grid_feat)
    out = jax.block_until_ready(out)

    ref = kan_gnn_reference(
        x, adj, params, num_layers=num_layers, grid_feat=grid_feat, emulate_bf16=True
    )
    ref = jax.block_until_ready(ref)

    assert out.shape == (N, out_feat)
    assert jnp.allclose(out, ref, rtol=1e-2, atol=1e-2), "Pallas output mismatch vs reference"

    print("KERNEL_OK")
</pallas_src>

<mosaic_0001>
module attributes {stable_mosaic.version = 11 : i64} {
  func.func @_fused_kangnn_kernel(%arg0: i32, %arg1: memref<16x128xf32, #tpu.memory_space<vmem>>, %arg2: memref<128x128xf32, #tpu.memory_space<vmem>>, %arg3: memref<32x16xf32, #tpu.memory_space<vmem>>, %arg4: memref<8x32x32xbf16, #tpu.memory_space<vmem>>, %arg5: memref<8x32x32xbf16, #tpu.memory_space<vmem>>, %arg6: memref<8x32xf32, #tpu.memory_space<vmem>>, %arg7: memref<8x128xf32, #tpu.memory_space<vmem>>) attributes {dimension_semantics = [#tpu.dimension_semantics<arbitrary>], iteration_bounds = array<i64: 1>, scalar_prefetch = 0 : i64, scratch_operands = 0 : i64, tpu.core_type = #tpu.core_type<tc>, window_params = [{pipeline_mode = #tpu.pipeline_mode<synchronous>, transform_indices = @transform_0, window_bounds = array<i64: 16, 128>}, {pipeline_mode = #tpu.pipeline_mode<synchronous>, transform_indices = @transform_1, window_bounds = array<i64: 128, 128>}, {pipeline_mode = #tpu.pipeline_mode<synchronous>, transform_indices = @transform_2, window_bounds = array<i64: 32, 16>}, {pipeline_mode = #tpu.pipeline_mode<synchronous>, transform_indices = @transform_3, window_bounds = array<i64: 8, 32, 32>}, {pipeline_mode = #tpu.pipeline_mode<synchronous>, transform_indices = @transform_4, window_bounds = array<i64: 8, 32, 32>}, {pipeline_mode = #tpu.pipeline_mode<synchronous>, transform_indices = @transform_5, window_bounds = array<i64: 8, 32>}, {pipeline_mode = #tpu.pipeline_mode<synchronous>, transform_indices = @transform_6, window_bounds = array<i64: 8, 128>}]} {
    %c0 = arith.constant 0 : index
    %c0_0 = arith.constant 0 : index
    %0 = vector.load %arg1[%c0, %c0_0] : memref<16x128xf32, #tpu.memory_space<vmem>>, vector<16x128xf32>
    %c0_1 = arith.constant 0 : index
    %c0_2 = arith.constant 0 : index
    %1 = vector.load %arg2[%c0_1, %c0_2] : memref<128x128xf32, #tpu.memory_space<vmem>>, vector<128x128xf32>
    %cst = arith.constant dense<0.000000e+00> : vector<16x128xf32>
    %2 = tpu.matmul %0, %1, %cst {dimension_numbers = #tpu.dot_dimension_numbers<[1], [0], [0], [1], [0, 0, 1, 1], [], []>} : vector<16x128xf32>, vector<128x128xf32>, vector<16x128xf32> -> vector<16x128xf32>
    %c0_3 = arith.constant 0 : index
    %c0_4 = arith.constant 0 : index
    %3 = vector.load %arg3[%c0_3, %c0_4] : memref<32x16xf32, #tpu.memory_space<vmem>>, vector<32x16xf32>
    %cst_5 = arith.constant dense<0.000000e+00> : vector<32x128xf32>
    %4 = tpu.matmul %3, %2, %cst_5 {dimension_numbers = #tpu.dot_dimension_numbers<[1], [0], [0], [1], [0, 0, 1, 1], [], []>} : vector<32x16xf32>, vector<16x128xf32>, vector<32x128xf32> -> vector<32x128xf32>
    %5 = math.cos %4 : vector<32x128xf32>
    %6 = math.sin %4 : vector<32x128xf32>
    %c0_6 = arith.constant 0 : index
    %c0_7 = arith.constant 0 : index
    %c0_8 = arith.constant 0 : index
    %7 = vector.load %arg4[%c0_6, %c0_7, %c0_8] : memref<8x32x32xbf16, #tpu.memory_space<vmem>>, vector<1x32x32xbf16>
    %8 = vector.shape_cast %7 : vector<1x32x32xbf16> to vector<32x32xbf16>
    %9 = arith.truncf %5 : vector<32x128xf32> to vector<32x128xbf16>
    %cst_9 = arith.constant dense<0.000000e+00> : vector<32x128xf32>
    %10 = tpu.matmul %8, %9, %cst_9 {dimension_numbers = #tpu.dot_dimension_numbers<[1], [0], [0], [1], [0, 0, 1, 1], [], []>} : vector<32x32xbf16>, vector<32x128xbf16>, vector<32x128xf32> -> vector<32x128xf32>
    %c1 = arith.constant 1 : index
    %c0_10 = arith.constant 0 : index
    %c0_11 = arith.constant 0 : index
    %11 = vector.load %arg4[%c1, %c0_10, %c0_11] : memref<8x32x32xbf16, #tpu.memory_space<vmem>>, vector<1x32x32xbf16>
    %12 = vector.shape_cast %11 : vector<1x32x32xbf16> to vector<32x32xbf16>
    %13 = arith.truncf %6 : vector<32x128xf32> to vector<32x128xbf16>
    %cst_12 = arith.constant dense<0.000000e+00> : vector<32x128xf32>
    %14 = tpu.matmul %12, %13, %cst_12 {dimension_numbers = #tpu.dot_dimension_numbers<[1], [0], [0], [1], [0, 0, 1, 1], [], []>} : vector<32x32xbf16>, vector<32x128xbf16>, vector<32x128xf32> -> vector<32x128xf32>
    %15 = arith.addf %10, %14 : vector<32x128xf32>
    %16 = arith.mulf %5, %5 : vector<32x128xf32>
    %17 = arith.mulf %6, %6 : vector<32x128xf32>
    %18 = arith.subf %16, %17 : vector<32x128xf32>
    %19 = arith.mulf %6, %5 : vector<32x128xf32>
    %20 = arith.mulf %5, %6 : vector<32x128xf32>
    %21 = arith.addf %19, %20 : vector<32x128xf32>
    %c2 = arith.constant 2 : index
    %c0_13 = arith.constant 0 : index
    %c0_14 = arith.constant 0 : index
    %22 = vector.load %arg4[%c2, %c0_13, %c0_14] : memref<8x32x32xbf16, #tpu.memory_space<vmem>>, vector<1x32x32xbf16>
    %23 = vector.shape_cast %22 : vector<1x32x32xbf16> to vector<32x32xbf16>
    %24 = arith.truncf %18 : vector<32x128xf32> to vector<32x128xbf16>
    %cst_15 = arith.constant dense<0.000000e+00> : vector<32x128xf32>
    %25 = tpu.matmul %23, %24, %cst_15 {dimension_numbers = #tpu.dot_dimension_numbers<[1], [0], [0], [1], [0, 0, 1, 1], [], []>} : vector<32x32xbf16>, vector<32x128xbf16>, vector<32x128xf32> -> vector<32x128xf32>
    %26 = arith.addf %15, %25 : vector<32x128xf32>
    %c3 = arith.constant 3 : index
    %c0_16 = arith.constant 0 : index
    %c0_17 = arith.constant 0 : index
    %27 = vector.load %arg4[%c3, %c0_16, %c0_17] : memref<8x32x32xbf16, #tpu.memory_space<vmem>>, vector<1x32x32xbf16>
    %28 = vector.shape_cast %27 : vector<1x32x32xbf16> to vector<32x32xbf16>
    %29 = arith.truncf %21 : vector<32x128xf32> to vector<32x128xbf16>
    %cst_18 = arith.constant dense<0.000000e+00> : vector<32x128xf32>
    %30 = tpu.matmul %28, %29, %cst_18 {dimension_numbers = #tpu.dot_dimension_numbers<[1], [0], [0], [1], [0, 0, 1, 1], [], []>} : vector<32x32xbf16>, vector<32x128xbf16>, vector<32x128xf32> -> vector<32x128xf32>
    %31 = arith.addf %26, %30 : vector<32x128xf32>
    %32 = arith.mulf %18, %5 : vector<32x128xf32>
    %33 = arith.mulf %21, %6 : vector<32x128xf32>
    %34 = arith.subf %32, %33 : vector<32x128xf32>
    %35 = arith.mulf %21, %5 : vector<32x128xf32>
    %36 = arith.mulf %18, %6 : vector<32x128xf32>
    %37 = arith.addf %35, %36 : vector<32x128xf32>
    %c4 = arith.constant 4 : index
    %c0_19 = arith.constant 0 : index
    %c0_20 = arith.constant 0 : index
    %38 = vector.load %arg4[%c4, %c0_19, %c0_20] : memref<8x32x32xbf16, #tpu.memory_space<vmem>>, vector<1x32x32xbf16>
    %39 = vector.shape_cast %38 : vector<1x32x32xbf16> to vector<32x32xbf16>
    %40 = arith.truncf %34 : vector<32x128xf32> to vector<32x128xbf16>
    %cst_21 = arith.constant dense<0.000000e+00> : vector<32x128xf32>
    %41 = tpu.matmul %39, %40, %cst_21 {dimension_numbers = #tpu.dot_dimension_numbers<[1], [0], [0], [1], [0, 0, 1, 1], [], []>} : vector<32x32xbf16>, vector<32x128xbf16>, vector<32x128xf32> -> vector<32x128xf32>
    %42 = arith.addf %31, %41 : vector<32x128xf32>
    %c5 = arith.constant 5 : index
    %c0_22 = arith.constant 0 : index
    %c0_23 = arith.constant 0 : index
    %43 = vector.load %arg4[%c5, %c0_22, %c0_23] : memref<8x32x32xbf16, #tpu.memory_space<vmem>>, vector<1x32x32xbf16>
    %44 = vector.shape_cast %43 : vector<1x32x32xbf16> to vector<32x32xbf16>
    %45 = arith.truncf %37 : vector<32x128xf32> to vector<32x128xbf16>
    %cst_24 = arith.constant dense<0.000000e+00> : vector<32x128xf32>
    %46 = tpu.matmul %44, %45, %cst_24 {dimension_numbers = #tpu.dot_dimension_numbers<[1], [0], [0], [1], [0, 0, 1, 1], [], []>} : vector<32x32xbf16>, vector<32x128xbf16>, vector<32x128xf32> -> vector<32x128xf32>
    %47 = arith.addf %42, %46 : vector<32x128xf32>
    %48 = arith.mulf %34, %5 : vector<32x128xf32>
    %49 = arith.mulf %37, %6 : vector<32x128xf32>
    %50 = arith.subf %48, %49 : vector<32x128xf32>
    %51 = arith.mulf %37, %5 : vector<32x128xf32>
    %52 = arith.mulf %34, %6 : vector<32x128xf32>
    %53 = arith.addf %51, %52 : vector<32x128xf32>
    %c6 = arith.constant 6 : index
    %c0_25 = arith.constant 0 : index
    %c0_26 = arith.constant 0 : index
    %54 = vector.load %arg4[%c6, %c0_25, %c0_26] : memref<8x32x32xbf16, #tpu.memory_space<vmem>>, vector<1x32x32xbf16>
    %55 = vector.shape_cast %54 : vector<1x32x32xbf16> to vector<32x32xbf16>
    %56 = arith.truncf %50 : vector<32x128xf32> to vector<32x128xbf16>
    %cst_27 = arith.constant dense<0.000000e+00> : vector<32x128xf32>
    %57 = tpu.matmul %55, %56, %cst_27 {dimension_numbers = #tpu.dot_dimension_numbers<[1], [0], [0], [1], [0, 0, 1, 1], [], []>} : vector<32x32xbf16>, vector<32x128xbf16>, vector<32x128xf32> -> vector<32x128xf32>
    %58 = arith.addf %47, %57 : vector<32x128xf32>
    %c7 = arith.constant 7 : index
    %c0_28 = arith.constant 0 : index
    %c0_29 = arith.constant 0 : index
    %59 = vector.load %arg4[%c7, %c0_28, %c0_29] : memref<8x32x32xbf16, #tpu.memory_space<vmem>>, vector<1x32x32xbf16>
    %60 = vector.shape_cast %59 : vector<1x32x32xbf16> to vector<32x32xbf16>
    %61 = arith.truncf %53 : vector<32x128xf32> to vector<32x128xbf16>
    %cst_30 = arith.constant dense<0.000000e+00> : vector<32x128xf32>
    %62 = tpu.matmul %60, %61, %cst_30 {dimension_numbers = #tpu.dot_dimension_numbers<[1], [0], [0], [1], [0, 0, 1, 1], [], []>} : vector<32x32xbf16>, vector<32x128xbf16>, vector<32x128xf32> -> vector<32x128xf32>
    %63 = arith.addf %58, %62 : vector<32x128xf32>
    %c0_31 = arith.constant 0 : index
    %c0_32 = arith.constant 0 : index
    %64 = vector.load %arg2[%c0_31, %c0_32] : memref<128x128xf32, #tpu.memory_space<vmem>>, vector<128x128xf32>
    %cst_33 = arith.constant dense<0.000000e+00> : vector<32x128xf32>
    %65 = tpu.matmul %63, %64, %cst_33 {dimension_numbers = #tpu.dot_dimension_numbers<[1], [0], [0], [1], [0, 0, 1, 1], [], []>} : vector<32x128xf32>, vector<128x128xf32>, vector<32x128xf32> -> vector<32x128xf32>
    %66 = math.cos %65 : vector<32x128xf32>
    %67 = math.sin %65 : vector<32x128xf32>
    %c0_34 = arith.constant 0 : index
    %c0_35 = arith.constant 0 : index
    %c0_36 = arith.constant 0 : index
    %68 = vector.load %arg5[%c0_34, %c0_35, %c0_36] : memref<8x32x32xbf16, #tpu.memory_space<vmem>>, vector<1x32x32xbf16>
    %69 = vector.shape_cast %68 : vector<1x32x32xbf16> to vector<32x32xbf16>
    %70 = arith.truncf %66 : vector<32x128xf32> to vector<32x128xbf16>
    %cst_37 = arith.constant dense<0.000000e+00> : vector<32x128xf32>
    %71 = tpu.matmul %69, %70, %cst_37 {dimension_numbers = #tpu.dot_dimension_numbers<[1], [0], [0], [1], [0, 0, 1, 1], [], []>} : vector<32x32xbf16>, vector<32x128xbf16>, vector<32x128xf32> -> vector<32x128xf32>
    %c1_38 = arith.constant 1 : index
    %c0_39 = arith.constant 0 : index
    %c0_40 = arith.constant 0 : index
    %72 = vector.load %arg5[%c1_38, %c0_39, %c0_40] : memref<8x32x32xbf16, #tpu.memory_space<vmem>>, vector<1x32x32xbf16>
    %73 = vector.shape_cast %72 : vector<1x32x32xbf16> to vector<32x32xbf16>
    %74 = arith.truncf %67 : vector<32x128xf32> to vector<32x128xbf16>
    %cst_41 = arith.constant dense<0.000000e+00> : vector<32x128xf32>
    %75 = tpu.matmul %73, %74, %cst_41 {dimension_numbers = #tpu.dot_dimension_numbers<[1], [0], [0], [1], [0, 0, 1, 1], [], []>} : vector<32x32xbf16>, vector<32x128xbf16>, vector<32x128xf32> -> vector<32x128xf32>
    %76 = arith.addf %71, %75 : vector<32x128xf32>
    %77 = arith.mulf %66, %66 : vector<32x128xf32>
    %78 = arith.mulf %67, %67 : vector<32x128xf32>
    %79 = arith.subf %77, %78 : vector<32x128xf32>
    %80 = arith.mulf %67, %66 : vector<32x128xf32>
    %81 = arith.mulf %66, %67 : vector<32x128xf32>
    %82 = arith.addf %80, %81 : vector<32x128xf32>
    %c2_42 = arith.constant 2 : index
    %c0_43 = arith.constant 0 : index
    %c0_44 = arith.constant 0 : index
    %83 = vector.load %arg5[%c2_42, %c0_43, %c0_44] : memref<8x32x32xbf16, #tpu.memory_space<vmem>>, vector<1x32x32xbf16>
    %84 = vector.shape_cast %83 : vector<1x32x32xbf16> to vector<32x32xbf16>
    %85 = arith.truncf %79 : vector<32x128xf32> to vector<32x128xbf16>
    %cst_45 = arith.constant dense<0.000000e+00> : vector<32x128xf32>
    %86 = tpu.matmul %84, %85, %cst_45 {dimension_numbers = #tpu.dot_dimension_numbers<[1], [0], [0], [1], [0, 0, 1, 1], [], []>} : vector<32x32xbf16>, vector<32x128xbf16>, vector<32x128xf32> -> vector<32x128xf32>
    %87 = arith.addf %76, %86 : vector<32x128xf32>
    %c3_46 = arith.constant 3 : index
    %c0_47 = arith.constant 0 : index
    %c0_48 = arith.constant 0 : index
    %88 = vector.load %arg5[%c3_46, %c0_47, %c0_48] : memref<8x32x32xbf16, #tpu.memory_space<vmem>>, vector<1x32x32xbf16>
    %89 = vector.shape_cast %88 : vector<1x32x32xbf16> to vector<32x32xbf16>
    %90 = arith.truncf %82 : vector<32x128xf32> to vector<32x128xbf16>
    %cst_49 = arith.constant dense<0.000000e+00> : vector<32x128xf32>
    %91 = tpu.matmul %89, %90, %cst_49 {dimension_numbers = #tpu.dot_dimension_numbers<[1], [0], [0], [1], [0, 0, 1, 1], [], []>} : vector<32x32xbf16>, vector<32x128xbf16>, vector<32x128xf32> -> vector<32x128xf32>
    %92 = arith.addf %87, %91 : vector<32x128xf32>
    %93 = arith.mulf %79, %66 : vector<32x128xf32>
    %94 = arith.mulf %82, %67 : vector<32x128xf32>
    %95 = arith.subf %93, %94 : vector<32x128xf32>
    %96 = arith.mulf %82, %66 : vector<32x128xf32>
    %97 = arith.mulf %79, %67 : vector<32x128xf32>
    %98 = arith.addf %96, %97 : vector<32x128xf32>
    %c4_50 = arith.constant 4 : index
    %c0_51 = arith.constant 0 : index
    %c0_52 = arith.constant 0 : index
    %99 = vector.load %arg5[%c4_50, %c0_51, %c0_52] : memref<8x32x32xbf16, #tpu.memory_space<vmem>>, vector<1x32x32xbf16>
    %100 = vector.shape_cast %99 : vector<1x32x32xbf16> to vector<32x32xbf16>
    %101 = arith.truncf %95 : vector<32x128xf32> to vector<32x128xbf16>
    %cst_53 = arith.constant dense<0.000000e+00> : vector<32x128xf32>
    %102 = tpu.matmul %100, %101, %cst_53 {dimension_numbers = #tpu.dot_dimension_numbers<[1], [0], [0], [1], [0, 0, 1, 1], [], []>} : vector<32x32xbf16>, vector<32x128xbf16>, vector<32x128xf32> -> vector<32x128xf32>
    %103 = arith.addf %92, %102 : vector<32x128xf32>
    %c5_54 = arith.constant 5 : index
    %c0_55 = arith.constant 0 : index
    %c0_56 = arith.constant 0 : index
    %104 = vector.load %arg5[%c5_54, %c0_55, %c0_56] : memref<8x32x32xbf16, #tpu.memory_space<vmem>>, vector<1x32x32xbf16>
    %105 = vector.shape_cast %104 : vector<1x32x32xbf16> to vector<32x32xbf16>
    %106 = arith.truncf %98 : vector<32x128xf32> to vector<32x128xbf16>
    %cst_57 = arith.constant dense<0.000000e+00> : vector<32x128xf32>
    %107 = tpu.matmul %105, %106, %cst_57 {dimension_numbers = #tpu.dot_dimension_numbers<[1], [0], [0], [1], [0, 0, 1, 1], [], []>} : vector<32x32xbf16>, vector<32x128xbf16>, vector<32x128xf32> -> vector<32x128xf32>
    %108 = arith.addf %103, %107 : vector<32x128xf32>
    %109 = arith.mulf %95, %66 : vector<32x128xf32>
    %110 = arith.mulf %98, %67 : vector<32x128xf32>
    %111 = arith.subf %109, %110 : vector<32x128xf32>
    %112 = arith.mulf %98, %66 : vector<32x128xf32>
    %113 = arith.mulf %95, %67 : vector<32x128xf32>
    %114 = arith.addf %112, %113 : vector<32x128xf32>
    %c6_58 = arith.constant 6 : index
    %c0_59 = arith.constant 0 : index
    %c0_60 = arith.constant 0 : index
    %115 = vector.load %arg5[%c6_58, %c0_59, %c0_60] : memref<8x32x32xbf16, #tpu.memory_space<vmem>>, vector<1x32x32xbf16>
    %116 = vector.shape_cast %115 : vector<1x32x32xbf16> to vector<32x32xbf16>
    %117 = arith.truncf %111 : vector<32x128xf32> to vector<32x128xbf16>
    %cst_61 = arith.constant dense<0.000000e+00> : vector<32x128xf32>
    %118 = tpu.matmul %116, %117, %cst_61 {dimension_numbers = #tpu.dot_dimension_numbers<[1], [0], [0], [1], [0, 0, 1, 1], [], []>} : vector<32x32xbf16>, vector<32x128xbf16>, vector<32x128xf32> -> vector<32x128xf32>
    %119 = arith.addf %108, %118 : vector<32x128xf32>
    %c7_62 = arith.constant 7 : index
    %c0_63 = arith.constant 0 : index
    %c0_64 = arith.constant 0 : index
    %120 = vector.load %arg5[%c7_62, %c0_63, %c0_64] : memref<8x32x32xbf16, #tpu.memory_space<vmem>>, vector<1x32x32xbf16>
    %121 = vector.shape_cast %120 : vector<1x32x32xbf16> to vector<32x32xbf16>
    %122 = arith.truncf %114 : vector<32x128xf32> to vector<32x128xbf16>
    %cst_65 = arith.constant dense<0.000000e+00> : vector<32x128xf32>
    %123 = tpu.matmul %121, %122, %cst_65 {dimension_numbers = #tpu.dot_dimension_numbers<[1], [0], [0], [1], [0, 0, 1, 1], [], []>} : vector<32x32xbf16>, vector<32x128xbf16>, vector<32x128xf32> -> vector<32x128xf32>
    %124 = arith.addf %119, %123 : vector<32x128xf32>
    %c0_66 = arith.constant 0 : index
    %c0_67 = arith.constant 0 : index
    %125 = vector.load %arg6[%c0_66, %c0_67] : memref<8x32xf32, #tpu.memory_space<vmem>>, vector<8x32xf32>
    %cst_68 = arith.constant dense<0.000000e+00> : vector<8x128xf32>
    %126 = tpu.matmul %125, %124, %cst_68 {dimension_numbers = #tpu.dot_dimension_numbers<[1], [0], [0], [1], [0, 0, 1, 1], [], []>} : vector<8x32xf32>, vector<32x128xf32>, vector<8x128xf32> -> vector<8x128xf32>
    %cst_69 = arith.constant dense<0xFF800000> : vector<128xf32>
    %127 = vector.multi_reduction <maximumf>, %126, %cst_69 [0] : vector<8x128xf32> to vector<128xf32>
    %128 = vector.shape_cast %127 : vector<128xf32> to vector<1x128xf32>
    %129 = vector.broadcast %128 : vector<1x128xf32> to vector<8x128xf32>
    %130 = arith.subf %126, %129 : vector<8x128xf32>
    %131 = math.exp %130 : vector<8x128xf32>
    %cst_70 = arith.constant dense<0.000000e+00> : vector<128xf32>
    %132 = vector.multi_reduction <add>, %131, %cst_70 [0] : vector<8x128xf32> to vector<128xf32>
    %133 = vector.shape_cast %132 : vector<128xf32> to vector<1x128xf32>
    %134 = math.log %133 : vector<1x128xf32>
    %135 = arith.addf %128, %134 : vector<1x128xf32>
    %136 = vector.broadcast %135 : vector<1x128xf32> to vector<8x128xf32>
    %137 = arith.subf %126, %136 : vector<8x128xf32>
    %c0_71 = arith.constant 0 : index
    %c0_72 = arith.constant 0 : index
    %138 = vector.load %arg7[%c0_71, %c0_72] : memref<8x128xf32, #tpu.memory_space<vmem>>, vector<8x128xf32>
    tpu.vector_store %arg7[%c0_71, %c0_72], %137 {strides = array<i32>} : memref<8x128xf32, #tpu.memory_space<vmem>>, vector<8x128xf32>,
    return
  }
  func.func @transform_0(%arg0: i32) -> (i32, i32) {
    %c0_i32 = arith.constant 0 : i32
    %c0_i32_0 = arith.constant 0 : i32
    %c0_i32_1 = arith.constant 0 : i32
    return %c0_i32, %c0_i32_0 : i32, i32
  }
  func.func @transform_1(%arg0: i32) -> (i32, i32) {
    %c0_i32 = arith.constant 0 : i32
    %c0_i32_0 = arith.constant 0 : i32
    %c0_i32_1 = arith.constant 0 : i32
    return %c0_i32, %c0_i32_0 : i32, i32
  }
  func.func @transform_2(%arg0: i32) -> (i32, i32) {
    %c0_i32 = arith.constant 0 : i32
    %c0_i32_0 = arith.constant 0 : i32
    %c0_i32_1 = arith.constant 0 : i32
    return %c0_i32, %c0_i32_0 : i32, i32
  }
  func.func @transform_3(%arg0: i32) -> (i32, i32, i32) {
    %c0_i32 = arith.constant 0 : i32
    %c0_i32_0 = arith.constant 0 : i32
    %c0_i32_1 = arith.constant 0 : i32
    %c0_i32_2 = arith.constant 0 : i32
    return %c0_i32, %c0_i32_0, %c0_i32_1 : i32, i32, i32
  }
  func.func @transform_4(%arg0: i32) -> (i32, i32, i32) {
    %c0_i32 = arith.constant 0 : i32
    %c0_i32_0 = arith.constant 0 : i32
    %c0_i32_1 = arith.constant 0 : i32
    %c0_i32_2 = arith.constant 0 : i32
    return %c0_i32, %c0_i32_0, %c0_i32_1 : i32, i32, i32
  }
  func.func @transform_5(%arg0: i32) -> (i32, i32) {
    %c0_i32 = arith.constant 0 : i32
    %c0_i32_0 = arith.constant 0 : i32
    %c0_i32_1 = arith.constant 0 : i32
    return %c0_i32, %c0_i32_0 : i32, i32
  }
  func.func @transform_6(%arg0: i32) -> (i32, i32) {
    %c0_i32 = arith.constant 0 : i32
    %c0_i32_0 = arith.constant 0 : i32
    %c0_i32_1 = arith.constant 0 : i32
    return %c0_i32, %c0_i32_0 : i32, i32
  }
}

</mosaic_0001>

<bundles_post_ra>
// kernel: tpu_custom_call.1
= control target key start
LH: loop header
LB: loop body
LE: loop exit
PB: predicated region body
PF: predicated region fallthrough
CT: control target
= control target key end

     0   :  { %11 = vsyncpa [#allocation3], 0  ;;  %s5230_s0 = inlined_call_operand.vmem [shape: f32[16,128], index: 0, kind: input, shape index: {}]   ;;  %s5231_s1 = inlined_call_operand.hbm [shape: f32[128,128], index: 1, kind: input, shape index: {}]   ;;  %s5232_s2 = inlined_call_operand.vmem [shape: f32[32,16], index: 2, kind: input, shape index: {}]   ;;  %s5233_s3 = inlined_call_operand.hbm [shape: bf16[8,32,32], index: 3, kind: input, shape index: {}]   ;;  %s5234_s4 = inlined_call_operand.hbm [shape: bf16[8,32,32], index: 4, kind: input, shape index: {}]   ;;  %s5235_s5 = inlined_call_operand.vmem [shape: f32[8,32], index: 5, kind: input, shape index: {}]   ;;  %s5236_s6 = inlined_call_operand.hbm [shape: f32[8,128], index: 6, kind: output, shape index: {}]  }
   0x1   :  { %12 = vsyncpa [#allocation6], 0 }
   0x2   :  { %13 = vsyncpa [#allocation4], 0  ;;  %s4256_s21 = smov [#allocation5]   ;;  %s4162_s25 = scalar_lea.hbm %s5233_s3, 2048 }
   0x3   :  { %s35_s22 = sshll.u32 %s4256_s21, 4  ;;  %p4163_p0 = scmp.ne.s32.totalorder %s5233_s3, %s4162_s25  ;;  %s36_s22 = int_to_ptr.vmem [resolvable:$true] %s35_s22 }
   0x4   :  { %p4166_p1 = scmp.lt.u32.totalorder %s4162_s25, %s5233_s3 }
   0x6   :  { %p4168_p2 = pnand %p4166_p1, %p4163_p0 }
   0x8   :  { %4171 = shalt.err (!%p4168_p2)
}
   0x9   :  { %s4172_s30 = scalar_lea.vmem %s36_s22, 2048  ;;  %p4177_p4 = scmp.lt.s32.totalorder %s36_s22, %s36_s22 }
   0xa   :  { %p4173_p3 = scmp.ne.s32.totalorder %s36_s22, %s4172_s30  ;;  %p4178_p5 = scmp.lt.s32.totalorder %s4172_s30, %s4172_s30 }
   0xc   :  { %p4179_p6 = por %p4178_p5, %p4177_p4 }
   0xe   :  { %p4180_p7 = pnand %p4179_p6, %p4173_p3 }
  0x10   :  { %4183 = shalt.err (!%p4180_p7)
}
  0x11   :  { %s4257_s7 = smov 64   ;;  %s4258_s8 = smov 4  }
  0x12   :  { %41 = dma.hbm_to_vmem [thread:$0]  %s5233_s3, 2048, %s36_s22, [#allocation6], %s4257_s7, %s4257_s7, %s4258_s8  }
  0x13   :  { %s4259_s11 = smov [#allocation2]   ;;  %s4184_s15 = scalar_lea.hbm %s5231_s1, 2048 }
  0x14   :  { %s21_s12 = sshll.u32 %s4259_s11, 4  ;;  %p4185_p8 = scmp.ne.s32.totalorder %s5231_s1, %s4184_s15  ;;  %s22_s12 = int_to_ptr.vmem [resolvable:$true] %s21_s12 }
  0x15   :  { %p4188_p9 = scmp.lt.u32.totalorder %s4184_s15, %s5231_s1 }
  0x17   :  { %p4190_p10 = pnand %p4188_p9, %p4185_p8 }
  0x19   :  { %4193 = shalt.err (!%p4190_p10)
}
  0x1a   :  { %s4194_s20 = scalar_lea.vmem %s22_s12, 2048  ;;  %p4199_p12 = scmp.lt.s32.totalorder %s22_s12, %s22_s12 }
  0x1b   :  { %p4195_p11 = scmp.ne.s32.totalorder %s22_s12, %s4194_s20  ;;  %p4200_p13 = scmp.lt.s32.totalorder %s4194_s20, %s4194_s20 }
  0x1d   :  { %p4201_p0 = por %p4200_p13, %p4199_p12 }
  0x1f   :  { %p4202_p1 = pnand %p4201_p0, %p4195_p11 }
  0x21   :  { %4205 = shalt.err (!%p4202_p1)
}
  0x22   :  { %s4260_s3 = smov 128   ;;  %s4261_s21 = smov 8  }
  0x23   :  { %27 = dma.hbm_to_vmem [thread:$0]  %s5231_s1, 2048, %s22_s12, [#allocation3], %s4260_s3, %s4260_s3, %s4261_s21  }
  0x24   :  { %s4262_s24 = smov [#allocation7]   ;;  %s4206_s28 = scalar_lea.hbm %s5234_s4, 2048 }
  0x25   :  { %s47_s25 = sshll.u32 %s4262_s24, 4  ;;  %p4207_p2 = scmp.ne.s32.totalorder %s5234_s4, %s4206_s28  ;;  %s48_s25 = int_to_ptr.vmem [resolvable:$true] %s47_s25 }
  0x26   :  { %p4210_p3 = scmp.lt.u32.totalorder %s4206_s28, %s5234_s4 }
  0x28   :  { %p4212_p4 = pnand %p4210_p3, %p4207_p2 }
  0x2a   :  { %4215 = shalt.err (!%p4212_p4)
}
  0x2b   :  { %s4216_s11 = scalar_lea.vmem %s48_s25, 2048  ;;  %p4221_p6 = scmp.lt.s32.totalorder %s48_s25, %s48_s25 }
  0x2c   :  { %p4217_p5 = scmp.ne.s32.totalorder %s48_s25, %s4216_s11  ;;  %p4222_p7 = scmp.lt.s32.totalorder %s4216_s11, %s4216_s11 }
  0x2e   :  { %p4223_p8 = por %p4222_p7, %p4221_p6 }
  0x30   :  { %p4224_p9 = pnand %p4223_p8, %p4217_p5 }
  0x32   :  { %4227 = shalt.err (!%p4224_p9)
}
  0x33   :  { %53 = dma.hbm_to_vmem [thread:$0]  %s5234_s4, 2048, %s48_s25, [#allocation6], %s4257_s7, %s4257_s7, %s4258_s8  }
  0x34   :  { %4250 = dma.done.wait [#allocation3], 2048  }
  0x35   :  { %4251 = vsyncadd [#allocation3], 4294965248 }
  0x36   :  { %4252 = dma.done.wait [#allocation6], 4096  }
  0x37   :  { %4253 = vsyncadd [#allocation6], 4294963200  ;;  %v68_v0 = vld [vmem:[#allocation2] sm:$0xff]  ;;  %v69_v1 = vld [vmem:[#allocation2 + $0x8] sm:$0xff]  ;;  %vm163_vm0 = vcmask 130048   ;;  %vm1112_vm13 = vcmask 261120  }
  0x38   :  { %v70_v2 = vld [vmem:[#allocation2 + $0x10] sm:$0xff]  ;;  %v3915_v3 = vpack.c.bf16 %v69_v1, %v68_v0  ;;  %v71_v4 = vld [vmem:[#allocation2 + $0x18] sm:$0xff]  ;;  %v72_v6 = vld [vmem:[#allocation2 + $0x20] sm:$0xff]  ;;  %v4263_v63 = vmov 683565275  }
  0x39   :  { %v3919_v5 = vpack.c.bf16 %v71_v4, %v70_v2  ;;  %v73_v7 = vld [vmem:[#allocation2 + $0x28] sm:$0xff]  ;;  %v74_v9 = vld [vmem:[#allocation2 + $0x30] sm:$0xff]  ;;  %v75_v10 = vld [vmem:[#allocation2 + $0x38] sm:$0xff] }
  0x3a   :  { %3916 = vmatprep.subr.bf16.mxu1 %v3915_v3  ;;  %v3923_v8 = vpack.c.bf16 %v73_v7, %v72_v6  ;;  %v66_v11 = vld [vmem:[%s5230_s0] sm:$0xff]  ;;  %v77_v13 = vld [vmem:[#allocation2 + $0x48] sm:$0xff]  ;;  %v3927_v14 = vpack.c.bf16 %v75_v10, %v74_v9  ;;  %v78_v15 = vld [vmem:[#allocation2 + $0x50] sm:$0xff]  ;;  %v4266_v7 = vmov 2102212464  }
  0x3b   :  { %3918 = vmatpush3.bf16.msra.mxu1 %v3915_v3  ;;  %3725 = vmatprep.mubr.f32.mxu1 %v66_v11  ;;  %v76_v12 = vld [vmem:[#allocation2 + $0x40] sm:$0xff]  ;;  %v79_v16 = vld [vmem:[#allocation2 + $0x58] sm:$0xff]  ;;  %v81_v19 = vld [vmem:[#allocation2 + $0x68] sm:$0xff]  ;;  %v4267_v9 = vmov 920167782  }
  0x3c   :  { %3920 = vmatprep.subr.bf16.mxu1 %v3919_v5  ;;  %v3931_v17 = vpack.c.bf16 %v77_v13, %v76_v12  ;;  %v80_v18 = vld [vmem:[#allocation2 + $0x60] sm:$0xff]  ;;  %v3935_v20 = vpack.c.bf16 %v79_v16, %v78_v15  ;;  %v82_v21 = vld [vmem:[#allocation2 + $0x70] sm:$0xff]  ;;  %v83_v22 = vld [vmem:[#allocation2 + $0x78] sm:$0xff]  ;;  %v4268_v16 = vmov 1326507024  }
  0x3d   :  { %v3939_v23 = vpack.c.bf16 %v81_v19, %v80_v18  ;;  %v3943_v24 = vpack.c.bf16 %v83_v22, %v82_v21  ;;  %v67_v25 = vld [vmem:[%s5230_s0 + $0x8] sm:$0xff]  ;;  %v159_v26 = vld [vmem:[%s5232_s2] sm:$0xff]  ;;  %v161_v31 = vld [vmem:[%s5232_s2 + $0x10] sm:$0xff] }
  0x3e   :  { %3732 = vmatprep.mubr.msk.f32.mxu0 %vm163_vm0, %v159_v26  ;;  %v160_v30 = vld [vmem:[%s5232_s2 + $0x8] sm:$0xff]  ;;  %v162_v32 = vld [vmem:[%s5232_s2 + $0x18] sm:$0xff] }
  0x3f   :  { %3922 = vmatpush3.bf16.msra.mxu1 %v3919_v5 }
  0x40   :  { %3924 = vmatprep.subr.bf16.mxu1 %v3923_v8 }
  0x43   :  { %3926 = vmatpush3.bf16.msra.mxu1 %v3923_v8 }
  0x44   :  { %3928 = vmatprep.subr.bf16.mxu1 %v3927_v14 }
  0x47   :  { %3930 = vmatpush3.bf16.msra.mxu1 %v3927_v14 }
  0x48   :  { %3932 = vmatprep.subr.bf16.mxu1 %v3931_v17 }
  0x4b   :  { %3934 = vmatpush3.bf16.msra.mxu1 %v3931_v17 }
  0x4c   :  { %3936 = vmatprep.subr.bf16.mxu1 %v3935_v20 }
  0x4f   :  { %3938 = vmatpush3.bf16.msra.mxu1 %v3935_v20 }
  0x50   :  { %3940 = vmatprep.subr.bf16.mxu1 %v3939_v23 }
  0x53   :  { %3942 = vmatpush3.bf16.msra.mxu1 %v3939_v23 }
  0x54   :  { %3944 = vmatprep.subr.bf16.mxu1 %v3943_v24 }
  0x57   :  { %3946 = vmatpush3.bf16.msra.mxu1 %v3943_v24 }
  0x5a   :  { %3726 = vmatmul.mubr.f32.vlgmr.msra.gmra.mrb[0].mxu1 %v67_v25 }
 0x12d   :  { %v3727_v27 = vpop.f32.mrb[0].mxu1 }
 0x12e   :  { %v150_v28 = vpop.f32.mrb[1].mxu1 }
 0x12f   :  { %v3947_v29 = vpack.c.bf16 %v3727_v27, %v150_v28 }
 0x131   :  { %3948 = vmatprep.subr.bf16.mxu0 %v3947_v29 }
 0x132   :  { %3950 = vmatpush3.bf16.msra.mxu0 %v3947_v29 }
 0x133   :  { %3952 = vmatprep.subr.bf16.mxu0 %v3915_v3 }
 0x135   :  { %3733 = vmatmul.mubr.msk.f32.vlgmr.msra.gmra.mrb[0].mxu0 %vm163_vm0, %v160_v30 }
 0x136   :  { %3735 = vmatprep.mubr.msk.f32.mxu0 %vm163_vm0, %v161_v31  ;;  %3954 = vmatpush3.bf16.msra.mxu0 %v3915_v3  ;;  %v4264_v3 = vmov 2475754826  }
 0x137   :  { %3956 = vmatprep.subr.bf16.mxu0 %v3919_v5 }
 0x139   :  { %3736 = vmatmul.mubr.msk.f32.gmra.mrb[2].mxu0 %vm163_vm0, %v162_v32 }
 0x13a   :  { %3958 = vmatpush3.bf16.msra.mxu0 %v3919_v5  ;;  %v4265_v5 = vmov 2131351028  }
 0x13b   :  { %3960 = vmatprep.subr.bf16.mxu0 %v3923_v8 }
 0x13e   :  { %3962 = vmatpush3.bf16.msra.mxu0 %v3923_v8 }
 0x13f   :  { %3964 = vmatprep.subr.bf16.mxu0 %v3927_v14 }
 0x142   :  { %3966 = vmatpush3.bf16.msra.mxu0 %v3927_v14 }
 0x143   :  { %3968 = vmatprep.subr.bf16.mxu0 %v3931_v17 }
 0x146   :  { %3970 = vmatpush3.bf16.msra.mxu0 %v3931_v17 }
 0x147   :  { %3972 = vmatprep.subr.bf16.mxu0 %v3935_v20 }
 0x14a   :  { %3974 = vmatpush3.bf16.msra.mxu0 %v3935_v20 }
 0x14b   :  { %3976 = vmatprep.subr.bf16.mxu0 %v3939_v23 }
 0x14e   :  { %3978 = vmatpush3.bf16.msra.mxu0 %v3939_v23 }
 0x14f   :  { %3980 = vmatprep.subr.bf16.mxu0 %v3943_v24 }
 0x152   :  { %3982 = vmatpush3.bf16.msra.mxu0 %v3943_v24 }
 0x208   :  { %v4368_v33 = vpop.f32.mrb[0].mxu0 }
 0x209   :  { %v364_v34 = vand.u32 2147483647, %v4368_v33  ;;  %v367_v35 = vand.u32 2139095040, %v4368_v33  ;;  %v4372_v36 = vpop.f32.mrb[1].mxu0  ;;  %vm366_vm0 = vcmp.lt.s32.totalorder %v4368_v33, 0 }
 0x20a   :  { %v261_v37 = vand.u32 2147483647, %v4372_v36  ;;  %v264_v38 = vand.u32 2139095040, %v4372_v36 }
 0x20b   :  { %v368_v39 = vshrl.u32 %v367_v35, 23  ;;  %v371_v40 = vand.u32 8388607, %v364_v34  ;;  %vm4466_vm15 = vcmp.le.f32.partialorder %v364_v34, 0.7853982 }
 0x20c   :  { %v265_v41 = vshrl.u32 %v264_v38, 23  ;;  %v268_v42 = vand.u32 8388607, %v261_v37  ;;  %v4380_v43 = vpop.f32.mrb[2].mxu0 }
 0x20d   :  { %v3455_v44 = vadd.s32 4294967169, %v368_v39  ;;  %v4382_v45 = vpop.f32.mrb[3].mxu0  ;;  %v573_v47 = vand.u32 2139095040, %v4380_v43  ;;  %v372_v49 = vor.u32 8388608, %v371_v40  ;;  %v570_v61 = vand.u32 2147483647, %v4380_v43 }
 0x20e   :  { %v3451_v46 = vadd.s32 4294967169, %v265_v41  ;;  %v269_v50 = vor.u32 8388608, %v268_v42 }
 0x20f   :  { %v374_v48 = vadd.s32 1, %v3455_v44  ;;  %v574_v52 = vshrl.u32 %v573_v47, 23  ;;  %v4385_v58 = vshll.u32 %v372_v49, 8 }
 0x210   :  { %v271_v51 = vadd.s32 1, %v3451_v46  ;;  %v4389_v60 = vshll.u32 %v269_v50, 8 }
 0x211   :  { %vm375_vm1 = vcmp.gt.s32.totalorder %v374_v48, 0  ;;  %v3463_v54 = vadd.s32 4294967169, %v574_v52 }
 0x212   :  { %v376_v53 = vsel %vm375_vm1, %v374_v48, 0  ;;  %vm272_vm2 = vcmp.gt.s32.totalorder %v271_v51, 0 }
 0x213   :  { %v377_v55 = vshrl.u32 %v376_v53, 5  ;;  %v378_v56 = vand.u32 31, %v376_v53  ;;  %v273_v57 = vsel %vm272_vm2, %v271_v51, 0  ;;  %v4393_v2 = vadd.s32 1, %v3463_v54 }
 0x214   :  { %v4387_v59 = vshrl.u32 %v273_v57, 5  ;;  %v275_v1 = vand.u32 31, %v273_v57  ;;  %vm263_vm2 = vcmp.lt.s32.totalorder %v4372_v36, 0 }
 0x215   :  { %v379_v62 = vsub.s32 32, %v378_v56  ;;  %v381_v0 = vshll.u32 %v4263_v63, %v378_v56  ;;  %v384_v4 = vshll.u32 %v4264_v3, %v378_v56  ;;  %v387_v6 = vshll.u32 %v4265_v5, %v378_v56 }
 0x216   :  { %v390_v8 = vshll.u32 %v4266_v7, %v378_v56  ;;  %v393_v10 = vshll.u32 %v4267_v9, %v378_v56  ;;  %vm396_vm3 = vcmp.lt.s32.totalorder %v377_v55, 1  ;;  %vm397_vm4 = vcmp.lt.s32.totalorder %v377_v55, 2 }
 0x217   :  { %v382_v11 = vshrl.u32 %v4264_v3, %v379_v62  ;;  %v385_v12 = vshrl.u32 %v4265_v5, %v379_v62  ;;  %v388_v13 = vshrl.u32 %v4266_v7, %v379_v62  ;;  %v380_v14 = vshrl.u32 %v4263_v63, %v379_v62 }
 0x218   :  { %v391_v15 = vshrl.u32 %v4267_v9, %v379_v62  ;;  %v394_v17 = vshrl.u32 %v4268_v16, %v379_v62  ;;  %v276_v21 = vsub.s32 32, %v275_v1  ;;  %vm398_vm5 = vcmp.lt.s32.totalorder %v377_v55, 3 }
 0x219   :  { %v383_v18 = vor.u32 %v382_v11, %v381_v0  ;;  %v386_v19 = vor.u32 %v385_v12, %v384_v4  ;;  %v389_v20 = vor.u32 %v388_v13, %v387_v6  ;;  %vm399_vm6 = vcmp.lt.s32.totalorder %v377_v55, 4 }
 0x21a   :  { %v392_v22 = vor.u32 %v391_v15, %v390_v8  ;;  %v395_v23 = vor.u32 %v394_v17, %v393_v10  ;;  %v278_v31 = vshll.u32 %v4263_v63, %v275_v1  ;;  %v279_v38 = vshrl.u32 %v4264_v3, %v276_v21 }
 0x21b   :  { %v400_v24 = vsel %vm396_vm3, %v380_v14, %v383_v18  ;;  %v401_v25 = vsel %vm399_vm6, %v389_v20, 2102212464  ;;  %v404_v26 = vsel %vm396_vm3, %v383_v18, %v386_v19  ;;  %v408_v27 = vsel %vm396_vm3, %v386_v19, %v389_v20 }
 0x21c   :  { %v402_v28 = vsel %vm398_vm5, %v386_v19, %v401_v25  ;;  %v405_v29 = vsel %vm399_vm6, %v392_v22, 920167782  ;;  %v409_v30 = vsel %vm399_vm6, %v395_v23, 1326507024  ;;  %v281_v39 = vshll.u32 %v4264_v3, %v275_v1 }
 0x21d   :  { %v406_v32 = vsel %vm398_vm5, %v389_v20, %v405_v29  ;;  %v410_v35 = vsel %vm398_vm5, %v392_v22, %v409_v30  ;;  %v403_v40 = vsel %vm397_vm4, %v400_v24, %v402_v28  ;;  %v282_v44 = vshrl.u32 %v4265_v5, %v276_v21 }
 0x21e   :  { %v407_v41 = vsel %vm397_vm4, %v404_v26, %v406_v32  ;;  %v411_v42 = vsel %vm397_vm4, %v408_v27, %v410_v35  ;;  %v280_v50 = vor.u32 %v279_v38, %v278_v31  ;;  %v284_v52 = vshll.u32 %v4265_v5, %v275_v1  ;;  %v4094_v26 = vld [vmem:[#allocation5 + $0x10] sm:$0xff]  }
 0x21f   :  { %v4416_v46 = vmul.u32.u64.low %v4385_v58, %v411_v42  ;;  %v4417_v47 = vmul.u32.u64.high %v4385_v58, %v411_v42, %v4416_v46  ;;  %v4420_v48 = vmul.u32.u64.low %v4385_v58, %v407_v41  ;;  %v4421_v49 = vmul.u32.u64.high %v4385_v58, %v407_v41, %v4420_v48  ;;  %3742 = vmatprep.mubr.msk.bf16.mxu1 %vm1112_vm13, %v4094_v26 }
 0x220   :  { %v283_v51 = vor.u32 %v282_v44, %v281_v39  ;;  %v285_v53 = vshrl.u32 %v4266_v7, %v276_v21  ;;  %v277_v54 = vshrl.u32 %v4263_v63, %v276_v21  ;;  %v287_v55 = vshll.u32 %v4266_v7, %v275_v1 }
 0x221   :  { %v288_v56 = vshrl.u32 %v4267_v9, %v276_v21  ;;  %v291_v57 = vshrl.u32 %v4268_v16, %v276_v21  ;;  %v419_v62 = vmul.u32 %v4385_v58, %v403_v40  ;;  %v290_v4 = vshll.u32 %v4267_v9, %v275_v1 }
 0x222   :  { %v286_v0 = vor.u32 %v285_v53, %v284_v52  ;;  %vm293_vm7 = vcmp.lt.s32.totalorder %v4387_v59, 1  ;;  %vm421_vm8 = vc.u32 %v4417_v47, %v4420_v48  ;;  %v422_v6 = vadd.s32 1, %v4421_v49 }
 0x223   :  { %v289_v8 = vor.u32 %v288_v56, %v287_v55  ;;  %vm294_vm9 = vcmp.lt.s32.totalorder %v4387_v59, 2  ;;  %v292_v10 = vor.u32 %v291_v57, %v290_v4  ;;  %vm295_vm10 = vcmp.lt.s32.totalorder %v4387_v59, 3 }
 0x224   :  { %vm296_vm11 = vcmp.lt.s32.totalorder %v4387_v59, 4  ;;  %v301_v11 = vsel %vm293_vm7, %v280_v50, %v283_v51  ;;  %v423_v58 = vsel %vm421_vm8, %v422_v6, %v4421_v49  ;;  %v305_v13 = vsel %vm293_vm7, %v283_v51, %v286_v0 }
 0x225   :  { %v298_v12 = vsel %vm296_vm11, %v286_v0, 2102212464  ;;  %v302_v1 = vsel %vm296_vm11, %v289_v8, 920167782  ;;  %v424_v14 = vadd.s32 %v423_v58, %v419_v62  ;;  %v297_v15 = vsel %vm293_vm7, %v277_v54, %v280_v50 }
 0x226   :  { %v303_v17 = vsel %vm295_vm10, %v286_v0, %v302_v1  ;;  %v306_v18 = vsel %vm296_vm11, %v292_v10, 1326507024  ;;  %v299_v19 = vsel %vm295_vm10, %v283_v51, %v298_v12  ;;  %vm581_vm12 = vcmp.gt.s32.totalorder %v4393_v2, 0 }
 0x227   :  { %v304_v20 = vsel %vm294_vm9, %v301_v11, %v303_v17  ;;  %v307_v21 = vsel %vm295_vm10, %v289_v8, %v306_v18  ;;  %v425_v22 = vadd.s32 536870912, %v424_v14  ;;  %v300_v30 = vsel %vm294_vm9, %v297_v15, %v299_v19 }
 0x228   :  { %v308_v23 = vsel %vm294_vm9, %v305_v13, %v307_v21  ;;  %v4446_v24 = vmul.u32.u64.low %v4389_v60, %v304_v20  ;;  %v4447_v25 = vmul.u32.u64.high %v4389_v60, %v304_v20, %v4446_v24  ;;  %v582_v31 = vsel %vm581_vm12, %v4393_v2, 0 }
 0x229   :  { %v4450_v27 = vmul.u32.u64.low %v4389_v60, %v308_v23  ;;  %v4451_v28 = vmul.u32.u64.high %v4389_v60, %v308_v23, %v4450_v27  ;;  %v426_v29 = vshrl.u32 %v425_v22, 30  ;;  %v577_v38 = vand.u32 8388607, %v570_v61 }
 0x22a   :  { %v319_v35 = vadd.s32 1, %v4447_v25  ;;  %v316_v39 = vmul.u32 %v4389_v60, %v300_v30  ;;  %v470_v40 = vand.u32 2139095040, %v4382_v45  ;;  %v584_v42 = vand.u32 31, %v582_v31 }
 0x22b   :  { %v427_v32 = vshll.u32 %v426_v29, 30  ;;  %vm318_vm14 = vc.u32 %v4451_v28, %v4446_v24  ;;  %v578_v46 = vor.u32 8388608, %v577_v38  ;;  %v450_v52 = vsub.s32 4, %v426_v29 }
 0x22c   :  { %v320_v59 = vsel %vm318_vm14, %v319_v35, %v4447_v25  ;;  %v471_v50 = vshrl.u32 %v470_v40, 23  ;;  %v585_v53 = vsub.s32 32, %v584_v42  ;;  %v420_v55 = vadd.s32 %v4420_v48, %v4417_v47 }
 0x22d   :  { %v428_v41 = vsub.s32 %v424_v14, %v427_v32  ;;  %v321_v2 = vadd.s32 %v320_v59, %v316_v39  ;;  %v4475_v57 = vshrl.u32 %v582_v31, 5  ;;  %v4477_v62 = vshll.u32 %v578_v46, 8 }
 0x22e   :  { %v4480_v0 = vadd.s32 %v4446_v24, %v4451_v28  ;;  %v587_v4 = vshll.u32 %v4263_v63, %v584_v42  ;;  %v3459_v6 = vadd.s32 4294967169, %v471_v50  ;;  %v451_v10 = vsel %vm366_vm0, %v450_v52, %v426_v29 }
 0x22f   :  { %v430_v44 = vsub.s32 0, %v428_v41  ;;  %v322_v49 = vadd.s32 536870912, %v321_v2  ;;  %v590_v11 = vshll.u32 %v4264_v3, %v584_v42  ;;  %v597_v47 = vshrl.u32 %v4267_v9, %v585_v53 }
 0x230   :  { %v588_v58 = vshrl.u32 %v4264_v3, %v585_v53  ;;  %v591_v12 = vshrl.u32 %v4265_v5, %v585_v53  ;;  %v594_v1 = vshrl.u32 %v4266_v7, %v585_v53  ;;  %v586_v13 = vshrl.u32 %v4263_v63, %v585_v53 }
 0x231   :  { %v3456_v51 = vmin.u32 %v430_v44, %v428_v41  ;;  %v4471_v54 = vshrl.u32 %v322_v49, 30  ;;  %v596_v14 = vshll.u32 %v4266_v7, %v584_v42  ;;  %v600_v15 = vshrl.u32 %v4268_v16, %v585_v53 }
 0x232   :  { %v4498_v18 = vsel %vm4466_vm15, 0, %v451_v10  ;;  %v593_v20 = vshll.u32 %v4265_v5, %v584_v42  ;;  %v599_v24 = vshll.u32 %v4267_v9, %v584_v42  ;;  %v589_v26 = vor.u32 %v588_v58, %v587_v4 }
 0x233   :  { %v432_v56 = vclz %v3456_v51  ;;  %v324_v34 = vshll.u32 %v4471_v54, 30  ;;  %v598_v23 = vor.u32 %v597_v47, %v596_v14  ;;  %v592_v27 = vor.u32 %v591_v12, %v590_v11 }
 0x234   :  { %v595_v28 = vor.u32 %v594_v1, %v593_v20  ;;  %v601_v32 = vor.u32 %v600_v15, %v599_v24  ;;  %v347_v38 = vsub.s32 4, %v4471_v54  ;;  %vm602_vm3 = vcmp.lt.s32.totalorder %v4475_v57, 1 }
 0x235   :  { %v3457_v8 = vadd.s32 4294967294, %v432_v56  ;;  %v4488_v48 = vsub.s32 %v321_v2, %v324_v34  ;;  %vm605_vm4 = vcmp.lt.s32.totalorder %v4475_v57, 4  ;;  %vm603_vm5 = vcmp.lt.s32.totalorder %v4475_v57, 2 }
 0x236   :  { %v611_v59 = vsel %vm605_vm4, %v598_v23, 920167782  ;;  %vm604_vm6 = vcmp.lt.s32.totalorder %v4475_v57, 3  ;;  %v614_v2 = vsel %vm602_vm3, %v592_v27, %v595_v28  ;;  %vm4516_vm7 = vcmp.le.f32.partialorder %v261_v37, 0.7853982 }
 0x237   :  { %vm3458_vm1 = vcmp.lt.s32.totalorder %v3457_v8, 0  ;;  %v327_v19 = vsub.s32 0, %v4488_v48  ;;  %v607_v49 = vsel %vm605_vm4, %v595_v28, 2102212464  ;;  %v612_v50 = vsel %vm604_vm6, %v595_v28, %v611_v59 }
 0x238   :  { %v435_v17 = vsel %vm3458_vm1, 0, %v3457_v8  ;;  %v615_v51 = vsel %vm605_vm4, %v601_v32, 1326507024  ;;  %v606_v53 = vsel %vm602_vm3, %v586_v13, %v589_v26  ;;  %v608_v11 = vsel %vm604_vm6, %v592_v27, %v607_v49 }
 0x239   :  { %v436_v21 = vsub.s32 32, %v435_v17  ;;  %v440_v22 = vsub.s32 4294967266, %v435_v17  ;;  %v3452_v25 = vmin.u32 %v327_v19, %v4488_v48  ;;  %v437_v29 = vshll.u32 %v428_v41, %v435_v17 }
 0x23a   :  { %v610_v41 = vsel %vm602_vm3, %v589_v26, %v592_v27  ;;  %v477_v47 = vadd.s32 1, %v3459_v6  ;;  %v348_v6 = vsel %vm263_vm2, %v347_v38, %v4471_v54  ;;  %v467_v26 = vand.u32 2147483647, %v4382_v45 }
 0x23b   :  { %v438_v30 = vshrl.u32 %v420_v55, %v436_v21  ;;  %v441_v31 = vadd.s32 127, %v440_v22  ;;  %v329_v35 = vclz %v3452_v25  ;;  %v616_v55 = vsel %vm604_vm6, %v598_v23, %v615_v51 }
 0x23c   :  { %v613_v37 = vsel %vm603_vm5, %v610_v41, %v612_v50  ;;  %v617_v4 = vsel %vm603_vm5, %v614_v2, %v616_v55  ;;  %v870_v21 = vadd.s32 3, %v4498_v18  ;;  %vm478_vm9 = vcmp.gt.s32.totalorder %v477_v47, 0 }
 0x23d   :  { %v439_v39 = vor.u32 %v438_v30, %v437_v29  ;;  %v442_v40 = vshll.u32 %v441_v31, 23  ;;  %v3453_v42 = vadd.s32 4294967294, %v329_v35  ;;  %v609_v23 = vsel %vm603_vm5, %v606_v53, %v608_v11 }
 0x23e   :  { %v4534_v1 = vmul.u32.u64.low %v4477_v62, %v617_v4  ;;  %v4535_v13 = vmul.u32.u64.high %v4477_v62, %v617_v4, %v4534_v1  ;;  %v4539_v17 = vmul.u32.u64.low %v4477_v62, %v613_v37  ;;  %v4540_v19 = vmul.u32.u64.high %v4477_v62, %v613_v37, %v4539_v17 }
 0x23f   :  { %v443_v44 = vor.u32 4788187, %v442_v40  ;;  %v446_v52 = vcvt.s32.f32 %v439_v39  ;;  %vm3454_vm8 = vcmp.lt.s32.totalorder %v3453_v42, 0  ;;  %v4552_v25 = vand.u32 3, %v4498_v18 }
 0x240   :  { %v332_v34 = vsel %vm3454_vm8, 0, %v3453_v42  ;;  %vm627_vm10 = vc.u32 %v4535_v13, %v4539_v17  ;;  %v350_v57 = vsel %vm4516_vm7, 0, %v348_v6  ;;  %v628_v28 = vadd.s32 1, %v4540_v19 }
 0x241   :  { %v444_v56 = vand.u32 2147483647, %v443_v44  ;;  %v333_v8 = vsub.s32 32, %v332_v34  ;;  %v337_v10 = vsub.s32 4294967266, %v332_v34  ;;  %v334_v12 = vshll.u32 %v4488_v48, %v332_v34 }
 0x242   :  { %v4563_v29 = vand.u32 3, %v870_v21  ;;  %v625_v18 = vmul.u32 %v4477_v62, %v609_v23  ;;  %v629_v35 = vsel %vm627_vm10, %v628_v28, %v4540_v19  ;;  %v766_v38 = vadd.s32 3, %v350_v57 }
 0x243   :  { %v447_v58 = vmul.f32 %v446_v52, %v444_v56  ;;  %v335_v14 = vshrl.u32 %v4480_v0, %v333_v8  ;;  %v338_v15 = vadd.s32 127, %v337_v10  ;;  %v479_v0 = vsel %vm478_vm9, %v477_v47, 0 }
 0x244   :  { %v481_v30 = vand.u32 31, %v479_v0  ;;  %v630_v60 = vadd.s32 %v629_v35, %v625_v18  ;;  %v4569_v39 = vand.u32 8388607, %v467_v26  ;;  %v4571_v42 = vshrl.u32 %v479_v0, 5 }
 0x245   :  { %v448_v20 = vxor.u32 2147483648, %v447_v58  ;;  %v336_v48 = vor.u32 %v335_v14, %v334_v12  ;;  %v339_v22 = vshll.u32 %v338_v15, 23  ;;  %vm462_vm11 = vcmp.eq.s32.totalorder %v4552_v25, 2 }
 0x246   :  { %v482_v40 = vsub.s32 32, %v481_v30  ;;  %v484_v41 = vshll.u32 %v4263_v63, %v481_v30  ;;  %v487_v62 = vshll.u32 %v4264_v3, %v481_v30  ;;  %v631_v2 = vadd.s32 536870912, %v630_v60 }
 0x247   :  { %v449_v24 = vsel %vm366_vm0, %v448_v20, %v447_v58  ;;  %v340_v27 = vor.u32 4788187, %v339_v22  ;;  %v343_v32 = vcvt.s32.f32 %v336_v48  ;;  %v490_v50 = vshll.u32 %v4265_v5, %v481_v30 }
 0x248   :  { %v452_v54 = vsel %vm4466_vm15, %v4368_v33, %v449_v24  ;;  %v485_v44 = vshrl.u32 %v4264_v3, %v482_v40  ;;  %v488_v49 = vshrl.u32 %v4265_v5, %v482_v40  ;;  %vm459_vm12 = vcmp.eq.s32.totalorder %v4552_v25, 0 }
 0x249   :  { %4126 = vcosq.f32 %v452_v54  ;;  %v341_v31 = vand.u32 2147483647, %v340_v27  ;;  %vm873_vm14 = vcmp.eq.s32.totalorder %v4563_v29, 0  ;;  %v491_v52 = vshrl.u32 %v4266_v7, %v482_v40 }
 0x24a   :  { %4128 = vsinq.f32 %v452_v54  ;;  %v493_v53 = vshll.u32 %v4266_v7, %v481_v30  ;;  %v494_v55 = vshrl.u32 %v4267_v9, %v482_v40  ;;  %vm458_vm15 = vcmp.lt.s32.totalorder %v4552_v25, 2 }
 0x24b   :  { %v344_v59 = vmul.f32 %v343_v32, %v341_v31  ;;  %vm872_vm0 = vcmp.lt.s32.totalorder %v4563_v29, 2  ;;  %vm876_vm1 = vcmp.eq.s32.totalorder %v4563_v29, 2  ;;  %v4587_v56 = vand.u32 3, %v350_v57 }
 0x24c   :  { %v4589_v34 = vshrl.u32 %v631_v2, 30  ;;  %v486_v37 = vor.u32 %v485_v44, %v484_v41  ;;  %vm456_vm3 = vweird.f32 %v4368_v33  ;;  %v489_v8 = vor.u32 %v488_v49, %v487_v62 }
 0x24d   :  { %v345_v51 = vxor.u32 2147483648, %v344_v59  ;;  %v492_v10 = vor.u32 %v491_v52, %v490_v50  ;;  %v495_v11 = vor.u32 %v494_v55, %v493_v53  ;;  %v4597_v58 = vand.u32 3, %v766_v38 }
 0x24e   :  { %v633_v12 = vshll.u32 %v4589_v34, 30  ;;  %vm502_vm4 = vcmp.lt.s32.totalorder %v4571_v42, 4  ;;  %v475_v1 = vor.u32 8388608, %v4569_v39  ;;  %v497_v14 = vshrl.u32 %v4268_v16, %v482_v40 }
 0x24f   :  { %v346_v4 = vsel %vm263_vm2, %v345_v51, %v344_v59  ;;  %v508_v15 = vsel %vm502_vm4, %v495_v11, 920167782  ;;  %vm499_vm2 = vcmp.lt.s32.totalorder %v4571_v42, 1  ;;  %vm501_vm5 = vcmp.lt.s32.totalorder %v4571_v42, 3 }
 0x250   :  { %v349_v47 = vsel %vm4516_vm7, %v4372_v36, %v346_v4  ;;  %v4605_v20 = vsub.s32 %v630_v60, %v633_v12  ;;  %v496_v6 = vshll.u32 %v4267_v9, %v481_v30  ;;  %v507_v48 = vsel %vm499_vm2, %v486_v37, %v489_v8 }
 0x251   :  { %4130 = vcosq.f32 %v349_v47  ;;  %v509_v22 = vsel %vm501_vm5, %v492_v10, %v508_v15  ;;  %v483_v24 = vshrl.u32 %v4263_v63, %v482_v40  ;;  %vm500_vm6 = vcmp.lt.s32.totalorder %v4571_v42, 2 }
 0x252   :  { %4132 = vsinq.f32 %v349_v47  ;;  %v636_v0 = vsub.s32 0, %v4605_v20  ;;  %vm359_vm7 = vcmp.eq.s32.totalorder %v4587_v56, 2  ;;  %v498_v57 = vor.u32 %v497_v14, %v496_v6 }
 0x253   :  { %v4127_v19 = vpop.eup %4126  ;;  %v504_v28 = vsel %vm502_vm4, %v492_v10, 2102212464  ;;  %vm356_vm8 = vcmp.eq.s32.totalorder %v4587_v56, 0  ;;  %v510_v32 = vsel %vm500_vm6, %v507_v48, %v509_v22  ;;  %vm355_vm9 = vcmp.lt.s32.totalorder %v4587_v56, 2 }
 0x254   :  { %v4129_v46 = vpop.eup %4128  ;;  %v463_v21 = vxor.u32 2147483648, %v4127_v19  ;;  %v3464_v31 = vmin.u32 %v636_v0, %v4605_v20  ;;  %vm768_vm10 = vcmp.lt.s32.totalorder %v4597_v58, 2  ;;  %v503_v60 = vsel %vm499_vm2, %v483_v24, %v486_v37 }
 0x255   :  { %v460_v23 = vxor.u32 2147483648, %v4129_v46  ;;  %v515_v39 = vshll.u32 %v475_v1, 8  ;;  %v505_v29 = vsel %vm501_vm5, %v489_v8, %v504_v28  ;;  %v511_v41 = vsel %vm499_vm2, %v489_v8, %v492_v10 }
 0x256   :  { %v464_v54 = vsel %vm462_vm11, %v463_v21, %v4129_v46  ;;  %v878_v27 = vsel %vm876_vm1, %v463_v21, %v4129_v46  ;;  %vm353_vm11 = vweird.f32 %v4372_v36  ;;  %v638_v25 = vclz %v3464_v31 }
 0x257   :  { %v461_v18 = vsel %vm459_vm12, %v4127_v19, %v460_v23  ;;  %v875_v30 = vsel %vm873_vm14, %v4127_v19, %v460_v23  ;;  %v512_v62 = vsel %vm502_vm4, %v498_v57, 1326507024  ;;  %vm769_vm12 = vcmp.eq.s32.totalorder %v4597_v58, 0 }
 0x258   :  { %v465_v35 = vsel %vm458_vm15, %v461_v18, %v464_v54  ;;  %v879_v38 = vsel %vm872_vm0, %v875_v30, %v878_v27  ;;  %v4655_v2 = vmul.u32.u64.low %v515_v39, %v510_v32  ;;  %v4656_v44 = vmul.u32.u64.high %v515_v39, %v510_v32, %v4655_v2 }
 0x259   :  { %v4642_v40 = vsel %vm456_vm3, nan, %v465_v35  ;;  %v4646_v59 = vsel %vm456_vm3, nan, %v879_v38  ;;  %vm772_vm14 = vcmp.eq.s32.totalorder %v4597_v58, 2  ;;  %v626_v33 = vadd.s32 %v4539_v17, %v4535_v13 }
 0x25a   :  { %v3465_v49 = vadd.s32 4294967294, %v638_v25  ;;  %v506_v51 = vsel %vm500_vm6, %v503_v60, %v505_v29  ;;  %v513_v52 = vsel %vm501_vm5, %v495_v11, %v512_v62  ;;  %v1234_v53 = vmul.f32 %v4642_v40, %v4642_v40 }
 0x25b   :  { %v4131_v50 = vpop.eup %4130  ;;  %v1246_v55 = vmul.f32 %v4646_v59, %v4642_v40  ;;  %v514_v13 = vsel %vm500_vm6, %v511_v41, %v513_v52  ;;  %v1238_v17 = vmul.f32 %v4646_v59, %v4646_v59  ;;  %v525_v21 = vadd.s32 1, %v4656_v44 }
 0x25c   :  { %v4133_v37 = vpop.eup %4132  ;;  %v360_v4 = vxor.u32 2147483648, %v4131_v50  ;;  %vm3466_vm15 = vcmp.lt.s32.totalorder %v3465_v49, 0  ;;  %v4675_v47 = vmul.u32.u64.low %v515_v39, %v514_v13  ;;  %v4676_v12 = vmul.u32.u64.high %v515_v39, %v514_v13, %v4675_v47 }
 0x25d   :  { %v357_v8 = vxor.u32 2147483648, %v4133_v37  ;;  %v641_v10 = vsel %vm3466_vm15, 0, %v3465_v49  ;;  %v1242_v23 = vsub.f32 %v1234_v53, %v1238_v17  ;;  %v522_v54 = vmul.u32 %v515_v39, %v506_v51 }
 0x25e   :  { %v361_v11 = vsel %vm359_vm7, %v360_v4, %v4133_v37  ;;  %v774_v1 = vsel %vm772_vm14, %v360_v4, %v4133_v37  ;;  %v642_v14 = vsub.s32 32, %v641_v10  ;;  %v643_v15 = vshll.u32 %v4605_v20, %v641_v10 }
 0x25f   :  { %v358_v42 = vsel %vm356_vm8, %v4131_v50, %v357_v8  ;;  %v771_v19 = vsel %vm769_vm12, %v4131_v50, %v357_v8  ;;  %v646_v46 = vsub.s32 4294967266, %v641_v10  ;;  %vm524_vm0 = vc.u32 %v4676_v12, %v4655_v2 }
 0x260   :  { %v362_v6 = vsel %vm355_vm9, %v358_v42, %v361_v11  ;;  %v775_v48 = vsel %vm768_vm10, %v771_v19, %v774_v1  ;;  %v644_v22 = vshrl.u32 %v626_v33, %v642_v14  ;;  %v526_v28 = vsel %vm524_vm0, %v525_v21, %v4656_v44 }
 0x261   :  { %v363_v20 = vsel %vm353_vm11, nan, %v362_v6  ;;  %v4696_v0 = vsel %vm353_vm11, nan, %v775_v48  ;;  %v647_v24 = vadd.s32 127, %v646_v46  ;;  %v527_v31 = vadd.s32 %v526_v28, %v522_v54 }
 0x262   :  { %v645_v27 = vor.u32 %v644_v22, %v643_v15  ;;  %v1100_v56 = vpack.c.bf16 %v4646_v59, %v4696_v0  ;;  %v4703_v58 = vpack.c.bf16 %v4642_v40, %v363_v20  ;;  %v1233_v18 = vmul.f32 %v363_v20, %v363_v20 }
 0x263   :  { %v648_v57 = vshll.u32 %v647_v24, 23  ;;  %v1237_v36 = vmul.f32 %v4696_v0, %v4696_v0  ;;  %v1245_v32 = vmul.f32 %v4696_v0, %v363_v20  ;;  %v1250_v35 = vadd.f32 %v1246_v55, %v1246_v55 }
 0x264   :  { %v652_v30 = vcvt.s32.f32 %v645_v27  ;;  %3738 = vmatprep.subr.bf16.mxu1 %v1100_v56  ;;  %v1406_v39 = vmul.f32 %v1242_v23, %v4642_v40  ;;  %v1422_v25 = vmul.f32 %v1242_v23, %v4646_v59  ;;  %v528_v29 = vadd.s32 536870912, %v527_v31 }
 0x265   :  { %v649_v38 = vor.u32 4788187, %v648_v57  ;;  %3739 = vmatpush3.bf16.msra.mxu1 %v1100_v56  ;;  %v1241_v60 = vsub.f32 %v1233_v18, %v1237_v36  ;;  %v1249_v41 = vadd.f32 %v1245_v32, %v1245_v32  ;;  %v1410_v62 = vmul.f32 %v1250_v35, %v4646_v59 }
 0x266   :  { %v1418_v44 = vmul.f32 %v1250_v35, %v4642_v40  ;;  %v4716_v52 = vshrl.u32 %v528_v29, 30  ;;  %v656_v13 = vsub.s32 4, %v4589_v34  ;;  %vm572_vm1 = vcmp.lt.s32.totalorder %v4380_v43, 0 }
 0x267   :  { %v650_v33 = vand.u32 2147483647, %v649_v38  ;;  %v4713_v49 = vpack.c.bf16 %v1242_v23, %v1241_v60  ;;  %v1405_v50 = vmul.f32 %v1241_v60, %v363_v20  ;;  %v1421_v51 = vmul.f32 %v1241_v60, %v4696_v0 }
 0x268   :  { %v4718_v53 = vpack.c.bf16 %v1250_v35, %v1249_v41  ;;  %v1409_v55 = vmul.f32 %v1249_v41, %v4696_v0  ;;  %v1414_v37 = vsub.f32 %v1406_v39, %v1410_v62  ;;  %v1417_v17 = vmul.f32 %v1249_v41, %v363_v20 }
 0x269   :  { %v653_v4 = vmul.f32 %v652_v30, %v650_v33  ;;  %v1426_v8 = vadd.f32 %v1422_v25, %v1418_v44  ;;  %v530_v10 = vshll.u32 %v4716_v52, 30  ;;  %vm571_vm3 = vcmp.le.f32.partialorder %v570_v61, 0.7853982 }
 0x26a   :  { %v1413_v47 = vsub.f32 %v1405_v50, %v1409_v55  ;;  %v1582_v11 = vmul.f32 %v1414_v37, %v4642_v40  ;;  %v1425_v14 = vadd.f32 %v1421_v51, %v1417_v17  ;;  %v657_v48 = vsel %vm572_vm1, %v656_v13, %v4589_v34 }
 0x26b   :  { %v654_v1 = vxor.u32 2147483648, %v653_v4  ;;  %v1586_v15 = vmul.f32 %v1426_v8, %v4646_v59  ;;  %v1594_v42 = vmul.f32 %v1426_v8, %v4642_v40  ;;  %v531_v19 = vsub.s32 %v527_v31, %v530_v10 }
 0x26c   :  { %v4729_v46 = vpack.c.bf16 %v1414_v37, %v1413_v47  ;;  %v1581_v21 = vmul.f32 %v1413_v47, %v363_v20  ;;  %v4732_v22 = vpack.c.bf16 %v1426_v8, %v1425_v14  ;;  %v1585_v23 = vmul.f32 %v1425_v14, %v4696_v0 }
 0x26d   :  { %v655_v6 = vsel %vm572_vm1, %v654_v1, %v653_v4  ;;  %v533_v54 = vsub.s32 0, %v531_v19  ;;  %v1590_v40 = vsub.f32 %v1582_v11, %v1586_v15  ;;  %v1593_v56 = vmul.f32 %v1425_v14, %v363_v20 }
 0x26e   :  { %v658_v24 = vsel %vm571_vm3, %v4380_v43, %v655_v6  ;;  %v1589_v27 = vsub.f32 %v1581_v21, %v1585_v23  ;;  %v659_v57 = vsel %vm571_vm3, 0, %v657_v48  ;;  %v1597_v18 = vmul.f32 %v1413_v47, %v4696_v0 }
 0x26f   :  { %4134 = vcosq.f32 %v658_v24  ;;  %v3460_v61 = vmin.u32 %v533_v54, %v531_v19  ;;  %v1598_v34 = vmul.f32 %v1414_v37, %v4646_v59  ;;  %v1078_v30 = vadd.s32 3, %v659_v57 }
 0x270   :  { %4136 = vsinq.f32 %v658_v24  ;;  %v4736_v28 = vpack.c.bf16 %v1590_v40, %v1589_v27  ;;  %v1601_v31 = vadd.f32 %v1597_v18, %v1593_v56  ;;  %v663_v38 = vand.u32 3, %v659_v57 }
 0x271   :  { %v535_v36 = vclz %v3460_v61  ;;  %v1602_v35 = vadd.f32 %v1598_v34, %v1594_v42  ;;  %v1079_v39 = vand.u32 3, %v1078_v30  ;;  %v523_v25 = vadd.s32 %v4655_v2, %v4676_v12 }
 0x272   :  { %vm665_vm2 = vcmp.eq.s32.totalorder %v663_v38, 0  ;;  %vm668_vm5 = vcmp.eq.s32.totalorder %v663_v38, 2  ;;  %vm664_vm8 = vcmp.lt.s32.totalorder %v663_v38, 2  ;;  %vm662_vm10 = vweird.f32 %v4380_v43 }
 0x273   :  { %v3461_v32 = vadd.s32 4294967294, %v535_v36  ;;  %v4740_v60 = vpack.c.bf16 %v1602_v35, %v1601_v31  ;;  %vm1081_vm6 = vcmp.eq.s32.totalorder %v1079_v39, 0  ;;  %vm1084_vm7 = vcmp.eq.s32.totalorder %v1079_v39, 2 }
 0x274   :  { %vm1080_vm9 = vcmp.lt.s32.totalorder %v1079_v39, 2  ;;  %v553_v6 = vsub.s32 4, %v4716_v52  ;;  %vm469_vm11 = vcmp.lt.s32.totalorder %v4382_v45, 0  ;;  %vm468_vm12 = vcmp.le.f32.partialorder %v467_v26, 0.7853982 }
 0x275   :  { %vm3462_vm4 = vcmp.lt.s32.totalorder %v3461_v32, 0 }
 0x276   :  { %v538_v20 = vsel %vm3462_vm4, 0, %v3461_v32  ;;  %v554_v57 = vsel %vm469_vm11, %v553_v6, %v4716_v52 }
 0x277   :  { %v539_v29 = vsub.s32 32, %v538_v20  ;;  %v543_v41 = vsub.s32 4294967266, %v538_v20  ;;  %v540_v59 = vshll.u32 %v531_v19, %v538_v20  ;;  %v556_v30 = vsel %vm468_vm12, 0, %v554_v57 }
 0x278   :  { %v974_v35 = vadd.s32 3, %v556_v30  ;;  %v560_v38 = vand.u32 3, %v556_v30  ;;  %v4101_v30 = vld [vmem:[#allocation5 + $0x38] sm:$0xff]  }
 0x279   :  { %v4135_v62 = vpop.eup %4134  ;;  %v541_v33 = vshrl.u32 %v523_v25, %v539_v29  ;;  %v544_v50 = vadd.s32 127, %v543_v41 }
 0x27a   :  { %v4137_v0 = vpop.eup %4136  ;;  %v669_v44 = vxor.u32 2147483648, %v4135_v62  ;;  %v975_v39 = vand.u32 3, %v974_v35  ;;  %vm565_vm14 = vcmp.eq.s32.totalorder %v560_v38, 2  ;;  %vm562_vm0 = vcmp.eq.s32.totalorder %v560_v38, 0  ;;  %v4107_v35 = vld [vmem:[#allocation5 + $0x68] sm:$0xff]  }
 0x27b   :  { %v666_v51 = vxor.u32 2147483648, %v4137_v0  ;;  %v542_v4 = vor.u32 %v541_v33, %v540_v59  ;;  %v545_v13 = vshll.u32 %v544_v50, 23  ;;  %vm561_vm3 = vcmp.lt.s32.totalorder %v560_v38, 2  ;;  %v4109_v38 = vld [vmem:[#allocation5 + $0x78] sm:$0xff]  }
 0x27c   :  { %v670_v55 = vsel %vm668_vm5, %v669_v44, %v4137_v0  ;;  %v1086_v37 = vsel %vm1084_vm7, %v669_v44, %v4137_v0  ;;  %vm980_vm15 = vcmp.eq.s32.totalorder %v975_v39, 2  ;;  %vm977_vm1 = vcmp.eq.s32.totalorder %v975_v39, 0 }
 0x27d   :  { %v667_v17 = vsel %vm665_vm2, %v4135_v62, %v666_v51  ;;  %v1083_v2 = vsel %vm1081_vm6, %v4135_v62, %v666_v51  ;;  %v546_v10 = vor.u32 4788187, %v545_v13  ;;  %v549_v1 = vcvt.s32.f32 %v542_v4 }
 0x27e   :  { %v671_v12 = vsel %vm664_vm8, %v667_v17, %v670_v55  ;;  %v1087_v8 = vsel %vm1080_vm9, %v1083_v2, %v1086_v37  ;;  %vm976_vm4 = vcmp.lt.s32.totalorder %v975_v39, 2  ;;  %vm559_vm2 = vweird.f32 %v4382_v45  ;;  %v4095_v17 = vld [vmem:[#allocation5 + $0x18] sm:$0xff]  }
 0x27f   :  { %v672_v47 = vsel %vm662_vm10, nan, %v671_v12  ;;  %v4745_v11 = vsel %vm662_vm10, nan, %v1087_v8  ;;  %v547_v14 = vand.u32 2147483647, %v546_v10  ;;  %v4096_v12 = vld [vmem:[#allocation5] sm:$0xff]  }
 0x280   :  { %v1236_v15 = vmul.f32 %v672_v47, %v672_v47  ;;  %v1240_v42 = vmul.f32 %v4745_v11, %v4745_v11  ;;  %v1248_v19 = vmul.f32 %v4745_v11, %v672_v47 }
 0x281   :  { %v550_v21 = vmul.f32 %v549_v1, %v547_v14 }
 0x282   :  { %v1244_v48 = vsub.f32 %v1236_v15, %v1240_v42  ;;  %v1252_v23 = vadd.f32 %v1248_v19, %v1248_v19 }
 0x283   :  { %v551_v43 = vxor.u32 2147483648, %v550_v21 }
 0x284   :  { %v1408_v24 = vmul.f32 %v1244_v48, %v672_v47  ;;  %v1412_v54 = vmul.f32 %v1252_v23, %v4745_v11  ;;  %v1420_v27 = vmul.f32 %v1252_v23, %v672_v47  ;;  %v1424_v40 = vmul.f32 %v1244_v48, %v4745_v11 }
 0x285   :  { %v552_v56 = vsel %vm469_vm11, %v551_v43, %v550_v21 }
 0x286   :  { %v1416_v61 = vsub.f32 %v1408_v24, %v1412_v54  ;;  %v555_v18 = vsel %vm468_vm12, %v4382_v45, %v552_v56  ;;  %v1428_v36 = vadd.f32 %v1424_v40, %v1420_v27 }
 0x287   :  { %4138 = vcosq.f32 %v555_v18 }
 0x288   :  { %v1600_v34 = vmul.f32 %v1416_v61, %v4745_v11  ;;  %4140 = vsinq.f32 %v555_v18  ;;  %v1596_v31 = vmul.f32 %v1428_v36, %v672_v47  ;;  %v1584_v10 = vmul.f32 %v1416_v61, %v672_v47  ;;  %v4097_v18 = vld [vmem:[#allocation5 + $0x8] sm:$0xff]  }
 0x289   :  { %v1588_v15 = vmul.f32 %v1428_v36, %v4745_v11 }
 0x28a   :  { %v1604_v32 = vadd.f32 %v1600_v34, %v1596_v31  ;;  %v4098_v34 = vld [vmem:[#allocation5 + $0x20] sm:$0xff]   ;;  %v4103_v31 = vld [vmem:[#allocation5 + $0x48] sm:$0xff]  }
 0x291   :  { %v4139_v20 = vpop.eup %4138 }
 0x292   :  { %v4141_v25 = vpop.eup %4140  ;;  %v566_v26 = vxor.u32 2147483648, %v4139_v20 }
 0x293   :  { %v563_v29 = vxor.u32 2147483648, %v4141_v25 }
 0x294   :  { %v567_v52 = vsel %vm565_vm14, %v566_v26, %v4141_v25  ;;  %v982_v41 = vsel %vm980_vm15, %v566_v26, %v4141_v25 }
 0x295   :  { %v564_v62 = vsel %vm562_vm0, %v4139_v20, %v563_v29  ;;  %v979_v0 = vsel %vm977_vm1, %v4139_v20, %v563_v29 }
 0x296   :  { %v568_v44 = vsel %vm561_vm3, %v564_v62, %v567_v52  ;;  %v983_v59 = vsel %vm976_vm4, %v979_v0, %v982_v41 }
 0x297   :  { %v569_v33 = vsel %vm559_vm2, nan, %v568_v44  ;;  %v984_v50 = vsel %vm559_vm2, nan, %v983_v59 }
 0x298   :  { %v1101_v51 = vpack.c.bf16 %v4745_v11, %v984_v50  ;;  %v1094_v55 = vpack.c.bf16 %v672_v47, %v569_v33  ;;  %v1235_v37 = vmul.f32 %v569_v33, %v569_v33  ;;  %v1239_v4 = vmul.f32 %v984_v50, %v984_v50 }
 0x299   :  { %v1247_v13 = vmul.f32 %v984_v50, %v569_v33  ;;  %v1592_v47 = vsub.f32 %v1584_v10, %v1588_v15 }
 0x29a   :  { %3740 = vmatprep.subr.bf16.mxu1 %v1101_v51  ;;  %v1243_v2 = vsub.f32 %v1235_v37, %v1239_v4 }
 0x29b   :  { %3741 = vmatpush3.bf16.msra.mxu1 %v1101_v51  ;;  %v1251_v8 = vadd.f32 %v1247_v13, %v1247_v13 }
 0x29c   :  { %3746 = vmatprep.subr.bf16.mxu1 %v4703_v58  ;;  %v1259_v45 = vpack.c.bf16 %v1244_v48, %v1243_v2  ;;  %v1407_v1 = vmul.f32 %v1243_v2, %v569_v33  ;;  %v1423_v14 = vmul.f32 %v1243_v2, %v984_v50 }
 0x29d   :  { %v1335_v42 = vpack.c.bf16 %v1252_v23, %v1251_v8  ;;  %v1411_v19 = vmul.f32 %v1251_v8, %v984_v50  ;;  %v1419_v21 = vmul.f32 %v1251_v8, %v569_v33 }
 0x29e   :  { %3743 = vmatmul.mubr.msk.bf16.vlgmr.msra.gmra.mrb[4].mxu1 %vm1112_vm13, %v4095_v17 }
 0x29f   :  { %3747 = vmatpush3.bf16.msra.mxu1 %v4703_v58  ;;  %3750 = vmatprep.mubr.msk.bf16.mxu1 %vm1112_vm13, %v4096_v12  ;;  %v1415_v6 = vsub.f32 %v1407_v1, %v1411_v19  ;;  %v1427_v43 = vadd.f32 %v1423_v14, %v1419_v21 }
 0x2a0   :  { %3748 = vmatprep.subr.bf16.mxu1 %v1094_v55 }
 0x2a1   :  { %v1435_v24 = vpack.c.bf16 %v1416_v61, %v1415_v6  ;;  %v1511_v54 = vpack.c.bf16 %v1428_v36, %v1427_v43  ;;  %v1583_v48 = vmul.f32 %v1415_v6, %v569_v33  ;;  %v1587_v27 = vmul.f32 %v1427_v43, %v984_v50  ;;  %v4099_v61 = vld [vmem:[#allocation5 + $0x28] sm:$0xff]   ;;  %v4100_v36 = vld [vmem:[#allocation5 + $0x30] sm:$0xff]  }
 0x2a2   :  { %v1595_v40 = vmul.f32 %v1427_v43, %v569_v33  ;;  %v1599_v56 = vmul.f32 %v1415_v6, %v984_v50 }
 0x2a3   :  { %3749 = vmatpush3.bf16.msra.mxu1 %v1094_v55  ;;  %v1591_v11 = vsub.f32 %v1583_v48, %v1587_v27 }
 0x2a4   :  { %3754 = vmatprep.subr.bf16.mxu1 %v4713_v49  ;;  %v1603_v23 = vadd.f32 %v1599_v56, %v1595_v40 }
 0x2a5   :  { %v1611_v57 = vpack.c.bf16 %v1592_v47, %v1591_v11 }
 0x2a6   :  { %v1687_v58 = vpack.c.bf16 %v1604_v32, %v1603_v23  ;;  %v4105_v32 = vld [vmem:[#allocation5 + $0x58] sm:$0xff]  }
 0x2aa   :  { %3751 = vmatmul.mubr.msk.bf16.vlgmr.msra.gmra.mrb[4].mxu1 %vm1112_vm13, %v4097_v18 }
 0x2ab   :  { %3755 = vmatpush3.bf16.msra.mxu1 %v4713_v49  ;;  %3758 = vmatprep.mubr.msk.bf16.mxu1 %vm1112_vm13, %v4098_v34  ;;  %v4102_v49 = vld [vmem:[#allocation5 + $0x40] sm:$0xff]  }
 0x2ac   :  { %3756 = vmatprep.subr.bf16.mxu1 %v1259_v45 }
 0x2af   :  { %3757 = vmatpush3.bf16.msra.mxu1 %v1259_v45 }
 0x2b0   :  { %3762 = vmatprep.subr.bf16.mxu1 %v4718_v53 }
 0x2b6   :  { %3759 = vmatmul.mubr.msk.bf16.vlgmr.msra.gmra.mrb[4].mxu1 %vm1112_vm13, %v4099_v61 }
 0x2b7   :  { %3763 = vmatpush3.bf16.msra.mxu1 %v4718_v53  ;;  %3766 = vmatprep.mubr.msk.bf16.mxu1 %vm1112_vm13, %v4100_v36  ;;  %v4104_v53 = vld [vmem:[#allocation5 + $0x50] sm:$0xff]  }
 0x2b8   :  { %3764 = vmatprep.subr.bf16.mxu1 %v1335_v42 }
 0x2bb   :  { %3765 = vmatpush3.bf16.msra.mxu1 %v1335_v42 }
 0x2bc   :  { %3770 = vmatprep.subr.bf16.mxu1 %v4729_v46 }
 0x2c2   :  { %3767 = vmatmul.mubr.msk.bf16.vlgmr.msra.gmra.mrb[4].mxu1 %vm1112_vm13, %v4101_v30 }
 0x2c3   :  { %3771 = vmatpush3.bf16.msra.mxu1 %v4729_v46  ;;  %3774 = vmatprep.mubr.msk.bf16.mxu1 %vm1112_vm13, %v4102_v49  ;;  %v4106_v46 = vld [vmem:[#allocation5 + $0x60] sm:$0xff]  }
 0x2c4   :  { %3772 = vmatprep.subr.bf16.mxu1 %v1435_v24 }
 0x2c7   :  { %3773 = vmatpush3.bf16.msra.mxu1 %v1435_v24 }
 0x2c8   :  { %3778 = vmatprep.subr.bf16.mxu1 %v4732_v22 }
 0x2ce   :  { %3775 = vmatmul.mubr.msk.bf16.vlgmr.msra.gmra.mrb[4].mxu1 %vm1112_vm13, %v4103_v31 }
 0x2cf   :  { %3779 = vmatpush3.bf16.msra.mxu1 %v4732_v22  ;;  %3782 = vmatprep.mubr.msk.bf16.mxu1 %vm1112_vm13, %v4104_v53  ;;  %v4108_v22 = vld [vmem:[#allocation5 + $0x70] sm:$0xff]  }
 0x2d0   :  { %3780 = vmatprep.subr.bf16.mxu1 %v1511_v54 }
 0x2d3   :  { %3781 = vmatpush3.bf16.msra.mxu1 %v1511_v54 }
 0x2d4   :  { %3786 = vmatprep.subr.bf16.mxu1 %v4736_v28 }
 0x2da   :  { %3783 = vmatmul.mubr.msk.bf16.vlgmr.msra.gmra.mrb[4].mxu1 %vm1112_vm13, %v4105_v32 }
 0x2db   :  { %3787 = vmatpush3.bf16.msra.mxu1 %v4736_v28  ;;  %3790 = vmatprep.mubr.msk.bf16.mxu1 %vm1112_vm13, %v4106_v46 }
 0x2dc   :  { %3788 = vmatprep.subr.bf16.mxu1 %v1611_v57 }
 0x2df   :  { %3789 = vmatpush3.bf16.msra.mxu1 %v1611_v57 }
 0x2e0   :  { %3794 = vmatprep.subr.bf16.mxu1 %v4740_v60 }
 0x2e6   :  { %3791 = vmatmul.mubr.msk.bf16.vlgmr.msra.gmra.mrb[4].mxu1 %vm1112_vm13, %v4107_v35 }
 0x2e7   :  { %3795 = vmatpush3.bf16.msra.mxu1 %v4740_v60  ;;  %3798 = vmatprep.mubr.msk.bf16.mxu1 %vm1112_vm13, %v4108_v22 }
 0x2e8   :  { %3796 = vmatprep.subr.bf16.mxu1 %v1687_v58 }
 0x2eb   :  { %3797 = vmatpush3.bf16.msra.mxu1 %v1687_v58 }
 0x2f2   :  { %3799 = vmatmul.mubr.msk.bf16.vlgmr.msra.gmra.mrb[4].mxu1 %vm1112_vm13, %v4109_v38 }
 0x3c5   :  { %v3800_v28 = vpop.f32.mrb[4].mxu1 }
 0x3c6   :  { %v1738_v39 = vpop.f32.mrb[5].mxu1 }
 0x3c7   :  { %v3801_v20 = vpop.f32.mrb[6].mxu1  ;;  %3834 = vmatprep.mubr.f32.mxu0 %v1738_v39 }
 0x3c8   :  { %v1741_v25 = vpop.f32.mrb[7].mxu1 }
 0x3c9   :  { %3835 = vmatmul.mubr.f32.vlgmr.msra.gmra.mrb[4].mxu0 %v1741_v25 }
 0x3ca   :  { %3837 = vmatprep.mubr.f32.mxu0 %v3800_v28 }
 0x3cd   :  { %3838 = vmatmul.mubr.f32.gmra.mrb[6].mxu0 %v3801_v20 }
 0x49c   :  { %v4791_v26 = vpop.f32.mrb[4].mxu0 }
 0x49d   :  { %v1945_v29 = vand.u32 2147483647, %v4791_v26  ;;  %v1948_v60 = vand.u32 2139095040, %v4791_v26  ;;  %v4795_v52 = vpop.f32.mrb[5].mxu0  ;;  %vm1947_vm2 = vcmp.lt.s32.totalorder %v4791_v26, 0 }
 0x49e   :  { %v1842_v41 = vand.u32 2147483647, %v4795_v52  ;;  %v1845_v62 = vand.u32 2139095040, %v4795_v52 }
 0x49f   :  { %v1949_v0 = vshrl.u32 %v1948_v60, 23  ;;  %v1952_v44 = vand.u32 8388607, %v1945_v29  ;;  %vm4889_vm4 = vcmp.le.f32.partialorder %v1945_v29, 0.7853982 }
 0x4a0   :  { %v1846_v59 = vshrl.u32 %v1845_v62, 23  ;;  %v1849_v33 = vand.u32 8388607, %v1842_v41  ;;  %v4803_v50 = vpop.f32.mrb[6].mxu0 }
 0x4a1   :  { %v3519_v51 = vadd.s32 4294967169, %v1949_v0  ;;  %v4805_v55 = vpop.f32.mrb[7].mxu0  ;;  %v2154_v4 = vand.u32 2139095040, %v4803_v50  ;;  %v1953_v17 = vor.u32 8388608, %v1952_v44  ;;  %v2151_v6 = vand.u32 2147483647, %v4803_v50 }
 0x4a2   :  { %v3515_v37 = vadd.s32 4294967169, %v1846_v59  ;;  %v1850_v2 = vor.u32 8388608, %v1849_v33 }
 0x4a3   :  { %v1955_v13 = vadd.s32 1, %v3519_v51  ;;  %v2155_v8 = vshrl.u32 %v2154_v4, 23  ;;  %v4808_v42 = vshll.u32 %v1953_v17, 8 }
 0x4a4   :  { %v1852_v12 = vadd.s32 1, %v3515_v37  ;;  %v4812_v21 = vshll.u32 %v1850_v2, 8  ;;  %v4110_v37 = vld [vmem:[#allocation7 + $0x10] sm:$0xff]  }
 0x4a5   :  { %vm1956_vm5 = vcmp.gt.s32.totalorder %v1955_v13, 0  ;;  %v3527_v45 = vadd.s32 4294967169, %v2155_v8  ;;  %3844 = vmatprep.mubr.msk.bf16.mxu0 %vm1112_vm13, %v4110_v37 }
 0x4a6   :  { %v1957_v10 = vsel %vm1956_vm5, %v1955_v13, 0  ;;  %vm1853_vm6 = vcmp.gt.s32.totalorder %v1852_v12, 0 }
 0x4a7   :  { %v1958_v1 = vshrl.u32 %v1957_v10, 5  ;;  %v1959_v14 = vand.u32 31, %v1957_v10  ;;  %v1854_v15 = vsel %vm1853_vm6, %v1852_v12, 0  ;;  %v4816_v54 = vadd.s32 1, %v3527_v45 }
 0x4a8   :  { %v4810_v19 = vshrl.u32 %v1854_v15, 5  ;;  %v1856_v24 = vand.u32 31, %v1854_v15  ;;  %vm1844_vm6 = vcmp.lt.s32.totalorder %v4795_v52, 0 }
 0x4a9   :  { %v1960_v43 = vsub.s32 32, %v1959_v14  ;;  %v1962_v47 = vshll.u32 %v4263_v63, %v1959_v14  ;;  %v1965_v48 = vshll.u32 %v4264_v3, %v1959_v14  ;;  %v1968_v27 = vshll.u32 %v4265_v5, %v1959_v14 }
 0x4aa   :  { %v1971_v40 = vshll.u32 %v4266_v7, %v1959_v14  ;;  %v1974_v56 = vshll.u32 %v4267_v9, %v1959_v14  ;;  %vm1977_vm7 = vcmp.lt.s32.totalorder %v1958_v1, 1  ;;  %vm1978_vm8 = vcmp.lt.s32.totalorder %v1958_v1, 2 }
 0x4ab   :  { %v1963_v11 = vshrl.u32 %v4264_v3, %v1960_v43  ;;  %v1966_v23 = vshrl.u32 %v4265_v5, %v1960_v43  ;;  %v1969_v57 = vshrl.u32 %v4266_v7, %v1960_v43  ;;  %v1961_v18 = vshrl.u32 %v4263_v63, %v1960_v43 }
 0x4ac   :  { %v1972_v58 = vshrl.u32 %v4267_v9, %v1960_v43  ;;  %v1975_v34 = vshrl.u32 %v4268_v16, %v1960_v43  ;;  %v1857_v49 = vsub.s32 32, %v1856_v24  ;;  %vm1979_vm9 = vcmp.lt.s32.totalorder %v1958_v1, 3 }
 0x4ad   :  { %v1964_v61 = vor.u32 %v1963_v11, %v1962_v47  ;;  %v1967_v36 = vor.u32 %v1966_v23, %v1965_v48  ;;  %v1970_v30 = vor.u32 %v1969_v57, %v1968_v27  ;;  %vm1980_vm10 = vcmp.lt.s32.totalorder %v1958_v1, 4 }
 0x4ae   :  { %v1973_v31 = vor.u32 %v1972_v58, %v1971_v40  ;;  %v1976_v53 = vor.u32 %v1975_v34, %v1974_v56  ;;  %v1859_v20 = vshll.u32 %v4263_v63, %v1856_v24  ;;  %v1860_v62 = vshrl.u32 %v4264_v3, %v1857_v49 }
 0x4af   :  { %v1981_v32 = vsel %vm1977_vm7, %v1961_v18, %v1964_v61  ;;  %v1982_v46 = vsel %vm1980_vm10, %v1970_v30, 2102212464  ;;  %v1985_v35 = vsel %vm1977_vm7, %v1964_v61, %v1967_v36  ;;  %v1989_v22 = vsel %vm1977_vm7, %v1967_v36, %v1970_v30 }
 0x4b0   :  { %v1983_v38 = vsel %vm1979_vm9, %v1967_v36, %v1982_v46  ;;  %v1986_v28 = vsel %vm1980_vm10, %v1973_v31, 920167782  ;;  %v1990_v39 = vsel %vm1980_vm10, %v1976_v53, 1326507024  ;;  %v1862_v0 = vshll.u32 %v4264_v3, %v1856_v24 }
 0x4b1   :  { %v1987_v25 = vsel %vm1979_vm9, %v1970_v30, %v1986_v28  ;;  %v1991_v60 = vsel %vm1979_vm9, %v1973_v31, %v1990_v39  ;;  %v1984_v44 = vsel %vm1978_vm8, %v1981_v32, %v1983_v38  ;;  %v1863_v51 = vshrl.u32 %v4265_v5, %v1857_v49 }
 0x4b2   :  { %v1988_v59 = vsel %vm1978_vm8, %v1985_v35, %v1987_v25  ;;  %v1992_v33 = vsel %vm1978_vm8, %v1989_v22, %v1991_v60  ;;  %v1861_v12 = vor.u32 %v1860_v62, %v1859_v20  ;;  %v1865_v10 = vshll.u32 %v4265_v5, %v1856_v24 }
 0x4b3   :  { %v4839_v4 = vmul.u32.u64.low %v4808_v42, %v1992_v33  ;;  %v4840_v13 = vmul.u32.u64.high %v4808_v42, %v1992_v33, %v4839_v4  ;;  %v4843_v17 = vmul.u32.u64.low %v4808_v42, %v1988_v59  ;;  %v4844_v2 = vmul.u32.u64.high %v4808_v42, %v1988_v59, %v4843_v17 }
 0x4b4   :  { %v1864_v8 = vor.u32 %v1863_v51, %v1862_v0  ;;  %v1866_v45 = vshrl.u32 %v4266_v7, %v1857_v49  ;;  %v1858_v1 = vshrl.u32 %v4263_v63, %v1857_v49  ;;  %v1868_v14 = vshll.u32 %v4266_v7, %v1856_v24 }
 0x4b5   :  { %v1869_v15 = vshrl.u32 %v4267_v9, %v1857_v49  ;;  %v1872_v43 = vshrl.u32 %v4268_v16, %v1857_v49  ;;  %v2000_v47 = vmul.u32 %v4808_v42, %v1984_v44  ;;  %v1871_v27 = vshll.u32 %v4267_v9, %v1856_v24 }
 0x4b6   :  { %v1867_v48 = vor.u32 %v1866_v45, %v1865_v10  ;;  %vm1874_vm11 = vcmp.lt.s32.totalorder %v4810_v19, 1  ;;  %vm2002_vm12 = vc.u32 %v4840_v13, %v4843_v17  ;;  %v2003_v40 = vadd.s32 1, %v4844_v2 }
 0x4b7   :  { %v1870_v56 = vor.u32 %v1869_v15, %v1868_v14  ;;  %vm1875_vm14 = vcmp.lt.s32.totalorder %v4810_v19, 2  ;;  %v1873_v11 = vor.u32 %v1872_v43, %v1871_v27  ;;  %vm1876_vm15 = vcmp.lt.s32.totalorder %v4810_v19, 3 }
 0x4b8   :  { %vm1877_vm0 = vcmp.lt.s32.totalorder %v4810_v19, 4  ;;  %v1882_v23 = vsel %vm1874_vm11, %v1861_v12, %v1864_v8  ;;  %v2004_v42 = vsel %vm2002_vm12, %v2003_v40, %v4844_v2  ;;  %v1886_v18 = vsel %vm1874_vm11, %v1864_v8, %v1867_v48 }
 0x4b9   :  { %v1879_v57 = vsel %vm1877_vm0, %v1867_v48, 2102212464  ;;  %v1883_v24 = vsel %vm1877_vm0, %v1870_v56, 920167782  ;;  %v2005_v58 = vadd.s32 %v2004_v42, %v2000_v47  ;;  %v1878_v34 = vsel %vm1874_vm11, %v1858_v1, %v1861_v12 }
 0x4ba   :  { %v1884_v61 = vsel %vm1876_vm15, %v1867_v48, %v1883_v24  ;;  %v1887_v36 = vsel %vm1877_vm0, %v1873_v11, 1326507024  ;;  %v1880_v30 = vsel %vm1876_vm15, %v1864_v8, %v1879_v57  ;;  %vm2162_vm1 = vcmp.gt.s32.totalorder %v4816_v54, 0 }
 0x4bb   :  { %v1885_v49 = vsel %vm1875_vm14, %v1882_v23, %v1884_v61  ;;  %v1888_v31 = vsel %vm1876_vm15, %v1870_v56, %v1887_v36  ;;  %v2006_v53 = vadd.s32 536870912, %v2005_v58  ;;  %v1881_v39 = vsel %vm1875_vm14, %v1878_v34, %v1880_v30 }
 0x4bc   :  { %v1889_v32 = vsel %vm1875_vm14, %v1886_v18, %v1888_v31  ;;  %v4870_v46 = vmul.u32.u64.low %v4812_v21, %v1885_v49  ;;  %v4871_v35 = vmul.u32.u64.high %v4812_v21, %v1885_v49, %v4870_v46  ;;  %v2163_v20 = vsel %vm2162_vm1, %v4816_v54, 0 }
 0x4bd   :  { %v4874_v22 = vmul.u32.u64.low %v4812_v21, %v1889_v32  ;;  %v4875_v38 = vmul.u32.u64.high %v4812_v21, %v1889_v32, %v4874_v22  ;;  %v2007_v28 = vshrl.u32 %v2006_v53, 30  ;;  %v2158_v62 = vand.u32 8388607, %v2151_v6 }
 0x4be   :  { %v1900_v60 = vadd.s32 1, %v4871_v35  ;;  %v1897_v0 = vmul.u32 %v4812_v21, %v1881_v39  ;;  %v2051_v44 = vand.u32 2139095040, %v4805_v55  ;;  %v2165_v51 = vand.u32 31, %v2163_v20 }
 0x4bf   :  { %v2008_v25 = vshll.u32 %v2007_v28, 30  ;;  %vm1899_vm3 = vc.u32 %v4875_v38, %v4870_v46  ;;  %v2159_v4 = vor.u32 8388608, %v2158_v62  ;;  %v2031_v8 = vsub.s32 4, %v2007_v28 }
 0x4c0   :  { %v1901_v33 = vsel %vm1899_vm3, %v1900_v60, %v4871_v35  ;;  %v2052_v2 = vshrl.u32 %v2051_v44, 23  ;;  %v2166_v10 = vsub.s32 32, %v2165_v51  ;;  %v2001_v1 = vadd.s32 %v4843_v17, %v4840_v13 }
 0x4c1   :  { %v2009_v59 = vsub.s32 %v2005_v58, %v2008_v25  ;;  %v1902_v19 = vadd.s32 %v1901_v33, %v1897_v0  ;;  %v4898_v15 = vshrl.u32 %v2163_v20, 5  ;;  %v4900_v43 = vshll.u32 %v2159_v4, 8 }
 0x4c2   :  { %v4903_v47 = vadd.s32 %v4870_v46, %v4875_v38  ;;  %v2168_v48 = vshll.u32 %v4263_v63, %v2165_v51  ;;  %v3523_v27 = vadd.s32 4294967169, %v2052_v2  ;;  %v2032_v56 = vsel %vm1947_vm2, %v2031_v8, %v2007_v28 }
 0x4c3   :  { %v2011_v37 = vsub.s32 0, %v2009_v59  ;;  %v1903_v54 = vadd.s32 536870912, %v1902_v19  ;;  %v2171_v11 = vshll.u32 %v4264_v3, %v2165_v51  ;;  %v2178_v13 = vshrl.u32 %v4267_v9, %v2166_v10 }
 0x4c4   :  { %v2169_v23 = vshrl.u32 %v4264_v3, %v2166_v10  ;;  %v2172_v42 = vshrl.u32 %v4265_v5, %v2166_v10  ;;  %v2175_v57 = vshrl.u32 %v4266_v7, %v2166_v10  ;;  %v2167_v24 = vshrl.u32 %v4263_v63, %v2166_v10 }
 0x4c5   :  { %v3520_v12 = vmin.u32 %v2011_v37, %v2009_v59  ;;  %v4894_v45 = vshrl.u32 %v1903_v54, 30  ;;  %v2177_v18 = vshll.u32 %v4266_v7, %v2165_v51  ;;  %v2181_v58 = vshrl.u32 %v4268_v16, %v2166_v10 }
 0x4c6   :  { %v4921_v61 = vsel %vm4889_vm4, 0, %v2032_v56  ;;  %v2174_v30 = vshll.u32 %v4265_v5, %v2165_v51  ;;  %v2180_v32 = vshll.u32 %v4267_v9, %v2165_v51  ;;  %v2170_v35 = vor.u32 %v2169_v23, %v2168_v48 }
 0x4c7   :  { %v2013_v14 = vclz %v3520_v12  ;;  %v1905_v29 = vshll.u32 %v4894_v45, 30  ;;  %v2179_v53 = vor.u32 %v2178_v13, %v2177_v18  ;;  %v2173_v22 = vor.u32 %v2172_v42, %v2171_v11 }
 0x4c8   :  { %v2176_v38 = vor.u32 %v2175_v57, %v2174_v30  ;;  %v2182_v25 = vor.u32 %v2181_v58, %v2180_v32  ;;  %v1928_v62 = vsub.s32 4, %v4894_v45  ;;  %vm2183_vm7 = vcmp.lt.s32.totalorder %v4898_v15, 1 }
 0x4c9   :  { %v3521_v40 = vadd.s32 4294967294, %v2013_v14  ;;  %v4911_v17 = vsub.s32 %v1902_v19, %v1905_v29  ;;  %vm2186_vm8 = vcmp.lt.s32.totalorder %v4898_v15, 4  ;;  %vm2184_vm9 = vcmp.lt.s32.totalorder %v4898_v15, 2 }
 0x4ca   :  { %v2192_v33 = vsel %vm2186_vm8, %v2179_v53, 920167782  ;;  %vm2185_vm10 = vcmp.lt.s32.totalorder %v4898_v15, 3  ;;  %v2195_v19 = vsel %vm2183_vm7, %v2173_v22, %v2176_v38  ;;  %vm4939_vm11 = vcmp.le.f32.partialorder %v1842_v41, 0.7853982 }
 0x4cb   :  { %vm3522_vm5 = vcmp.lt.s32.totalorder %v3521_v40, 0  ;;  %v1908_v36 = vsub.s32 0, %v4911_v17  ;;  %v2188_v54 = vsel %vm2186_vm8, %v2176_v38, 2102212464  ;;  %v2193_v2 = vsel %vm2185_vm10, %v2176_v38, %v2192_v33 }
 0x4cc   :  { %v2016_v34 = vsel %vm3522_vm5, 0, %v3521_v40  ;;  %v2196_v12 = vsel %vm2186_vm8, %v2182_v25, 1326507024  ;;  %v2187_v10 = vsel %vm2183_vm7, %v2167_v24, %v2170_v35  ;;  %v2189_v11 = vsel %vm2185_vm10, %v2173_v22, %v2188_v54 }
 0x4cd   :  { %v2017_v49 = vsub.s32 32, %v2016_v34  ;;  %v2021_v31 = vsub.s32 4294967266, %v2016_v34  ;;  %v3516_v46 = vmin.u32 %v1908_v36, %v4911_v17  ;;  %v2018_v28 = vshll.u32 %v2009_v59, %v2016_v34 }
 0x4ce   :  { %v2191_v59 = vsel %vm2183_vm7, %v2170_v35, %v2173_v22  ;;  %v2058_v13 = vadd.s32 1, %v3523_v27  ;;  %v1929_v27 = vsel %vm1844_vm6, %v1928_v62, %v4894_v45  ;;  %v2048_v35 = vand.u32 2147483647, %v4805_v55 }
 0x4cf   :  { %v2019_v39 = vshrl.u32 %v2001_v1, %v2017_v49  ;;  %v2022_v20 = vadd.s32 127, %v2021_v31  ;;  %v1910_v60 = vclz %v3516_v46  ;;  %v2197_v1 = vsel %vm2185_vm10, %v2179_v53, %v2196_v12 }
 0x4d0   :  { %v2194_v41 = vsel %vm2184_vm9, %v2191_v59, %v2193_v2  ;;  %v2198_v48 = vsel %vm2184_vm9, %v2195_v19, %v2197_v1  ;;  %v2451_v49 = vadd.s32 3, %v4921_v61  ;;  %vm2059_vm14 = vcmp.gt.s32.totalorder %v2058_v13, 0 }
 0x4d1   :  { %v2020_v0 = vor.u32 %v2019_v39, %v2018_v28  ;;  %v2023_v44 = vshll.u32 %v2022_v20, 23  ;;  %v3517_v51 = vadd.s32 4294967294, %v1910_v60  ;;  %v2190_v53 = vsel %vm2184_vm9, %v2187_v10, %v2189_v11 }
 0x4d2   :  { %v4957_v57 = vmul.u32.u64.low %v4900_v43, %v2198_v48  ;;  %v4958_v24 = vmul.u32.u64.high %v4900_v43, %v2198_v48, %v4957_v57  ;;  %v4962_v34 = vmul.u32.u64.low %v4900_v43, %v2194_v41  ;;  %v4963_v36 = vmul.u32.u64.high %v4900_v43, %v2194_v41, %v4962_v34 }
 0x4d3   :  { %v2024_v37 = vor.u32 4788187, %v2023_v44  ;;  %v2027_v8 = vcvt.s32.f32 %v2020_v0  ;;  %vm3518_vm12 = vcmp.lt.s32.totalorder %v3517_v51, 0  ;;  %v4975_v46 = vand.u32 3, %v4921_v61 }
 0x4d4   :  { %v1913_v29 = vsel %vm3518_vm12, 0, %v3517_v51  ;;  %vm2208_vm15 = vc.u32 %v4958_v24, %v4962_v34  ;;  %v1931_v15 = vsel %vm4939_vm11, 0, %v1929_v27  ;;  %v2209_v38 = vadd.s32 1, %v4963_v36 }
 0x4d5   :  { %v2025_v14 = vand.u32 2147483647, %v2024_v37  ;;  %v1914_v40 = vsub.s32 32, %v1913_v29  ;;  %v1918_v56 = vsub.s32 4294967266, %v1913_v29  ;;  %v1915_v42 = vshll.u32 %v4911_v17, %v1913_v29 }
 0x4d6   :  { %v4986_v28 = vand.u32 3, %v2451_v49  ;;  %v2206_v61 = vmul.u32 %v4900_v43, %v2190_v53  ;;  %v2210_v60 = vsel %vm2208_vm15, %v2209_v38, %v4963_v36  ;;  %v2347_v62 = vadd.s32 3, %v1931_v15 }
 0x4d7   :  { %v2028_v23 = vmul.f32 %v2027_v8, %v2025_v14  ;;  %v1916_v18 = vshrl.u32 %v4903_v47, %v1914_v40  ;;  %v1919_v58 = vadd.s32 127, %v1918_v56  ;;  %v2060_v47 = vsel %vm2059_vm14, %v2058_v13, 0 }
 0x4d8   :  { %v2062_v39 = vand.u32 31, %v2060_v47  ;;  %v2211_v21 = vadd.s32 %v2210_v60, %v2206_v61  ;;  %v4992_v0 = vand.u32 8388607, %v2048_v35  ;;  %v4994_v51 = vshrl.u32 %v2060_v47, 5 }
 0x4d9   :  { %v2029_v30 = vxor.u32 2147483648, %v2028_v23  ;;  %v1917_v17 = vor.u32 %v1916_v18, %v1915_v42  ;;  %v1920_v31 = vshll.u32 %v1919_v58, 23  ;;  %vm2043_vm0 = vcmp.eq.s32.totalorder %v4975_v46, 2 }
 0x4da   :  { %v2063_v44 = vsub.s32 32, %v2062_v39  ;;  %v2065_v59 = vshll.u32 %v4263_v63, %v2062_v39  ;;  %v2068_v43 = vshll.u32 %v4264_v3, %v2062_v39  ;;  %v2212_v19 = vadd.s32 536870912, %v2211_v21 }
 0x4db   :  { %v2030_v32 = vsel %vm1947_vm2, %v2029_v30, %v2028_v23  ;;  %v1921_v22 = vor.u32 4788187, %v1920_v31  ;;  %v1924_v25 = vcvt.s32.f32 %v1917_v17  ;;  %v2071_v2 = vshll.u32 %v4265_v5, %v2062_v39 }
 0x4dc   :  { %v2033_v45 = vsel %vm4889_vm4, %v4791_v26, %v2030_v32  ;;  %v2066_v37 = vshrl.u32 %v4264_v3, %v2063_v44  ;;  %v2069_v54 = vshrl.u32 %v4265_v5, %v2063_v44  ;;  %vm2040_vm1 = vcmp.eq.s32.totalorder %v4975_v46, 0 }
 0x4dd   :  { %4142 = vcosq.f32 %v2033_v45  ;;  %v1922_v20 = vand.u32 2147483647, %v1921_v22  ;;  %vm2454_vm3 = vcmp.eq.s32.totalorder %v4986_v28, 0  ;;  %v2072_v8 = vshrl.u32 %v4266_v7, %v2063_v44 }
 0x4de   :  { %4144 = vsinq.f32 %v2033_v45  ;;  %v2074_v10 = vshll.u32 %v4266_v7, %v2062_v39  ;;  %v2075_v1 = vshrl.u32 %v4267_v9, %v2063_v44  ;;  %vm2039_vm4 = vcmp.lt.s32.totalorder %v4975_v46, 2 }
 0x4df   :  { %v1925_v33 = vmul.f32 %v1924_v25, %v1922_v20  ;;  %vm2453_vm2 = vcmp.lt.s32.totalorder %v4986_v28, 2  ;;  %vm2457_vm5 = vcmp.eq.s32.totalorder %v4986_v28, 2  ;;  %v5010_v3 = vand.u32 3, %v1931_v15 }
 0x4e0   :  { %v5012_v5 = vshrl.u32 %v2212_v19, 30  ;;  %v2067_v14 = vor.u32 %v2066_v37, %v2065_v59  ;;  %vm2037_vm7 = vweird.f32 %v4791_v26  ;;  %v2070_v41 = vor.u32 %v2069_v54, %v2068_v43 }
 0x4e1   :  { %v1926_v12 = vxor.u32 2147483648, %v1925_v33  ;;  %v2073_v7 = vor.u32 %v2072_v8, %v2071_v2  ;;  %v2076_v48 = vor.u32 %v2075_v1, %v2074_v10  ;;  %v5020_v56 = vand.u32 3, %v2347_v62 }
 0x4e2   :  { %v2214_v11 = vshll.u32 %v5012_v5, 30  ;;  %vm2083_vm8 = vcmp.lt.s32.totalorder %v4994_v51, 4  ;;  %v2056_v13 = vor.u32 8388608, %v4992_v0  ;;  %v2078_v23 = vshrl.u32 %v4268_v16, %v2063_v44 }
 0x4e3   :  { %v1927_v29 = vsel %vm1844_vm6, %v1926_v12, %v1925_v33  ;;  %v2089_v42 = vsel %vm2083_vm8, %v2076_v48, 920167782  ;;  %vm2080_vm6 = vcmp.lt.s32.totalorder %v4994_v51, 1  ;;  %vm2082_vm9 = vcmp.lt.s32.totalorder %v4994_v51, 3 }
 0x4e4   :  { %v1930_v40 = vsel %vm4939_vm11, %v4795_v52, %v1927_v29  ;;  %v5028_v18 = vsub.s32 %v2211_v21, %v2214_v11  ;;  %v2077_v36 = vshll.u32 %v4267_v9, %v2062_v39  ;;  %v2088_v30 = vsel %vm2080_vm6, %v2067_v14, %v2070_v41 }
 0x4e5   :  { %4146 = vcosq.f32 %v1930_v40  ;;  %v2090_v16 = vsel %vm2082_vm9, %v2073_v7, %v2089_v42  ;;  %v2064_v17 = vshrl.u32 %v4263_v63, %v2063_v44  ;;  %vm2081_vm10 = vcmp.lt.s32.totalorder %v4994_v51, 2 }
 0x4e6   :  { %4148 = vsinq.f32 %v1930_v40  ;;  %v2217_v27 = vsub.s32 0, %v5028_v18  ;;  %vm1940_vm11 = vcmp.eq.s32.totalorder %v5010_v3, 2  ;;  %v2079_v9 = vor.u32 %v2078_v23, %v2077_v36 }
 0x4e7   :  { %v4143_v57 = vpop.eup %4142  ;;  %v2085_v47 = vsel %vm2083_vm8, %v2073_v7, 2102212464  ;;  %vm1937_vm12 = vcmp.eq.s32.totalorder %v5010_v3, 0  ;;  %v2091_v22 = vsel %vm2081_vm10, %v2088_v30, %v2090_v16  ;;  %vm1936_vm14 = vcmp.lt.s32.totalorder %v5010_v3, 2 }
 0x4e8   :  { %v4145_v4 = vpop.eup %4144  ;;  %v2044_v58 = vxor.u32 2147483648, %v4143_v57  ;;  %v3528_v45 = vmin.u32 %v2217_v27, %v5028_v18  ;;  %vm2349_vm15 = vcmp.lt.s32.totalorder %v5020_v56, 2  ;;  %v2084_v61 = vsel %vm2080_vm6, %v2064_v17, %v2067_v14 }
 0x4e9   :  { %v2041_v49 = vxor.u32 2147483648, %v4145_v4  ;;  %v2096_v39 = vshll.u32 %v2056_v13, 8  ;;  %v2086_v28 = vsel %vm2082_vm9, %v2070_v41, %v2085_v47  ;;  %v2092_v60 = vsel %vm2080_vm6, %v2070_v41, %v2073_v7 }
 0x4ea   :  { %v2045_v31 = vsel %vm2043_vm0, %v2044_v58, %v4145_v4  ;;  %v2459_v53 = vsel %vm2457_vm5, %v2044_v58, %v4145_v4  ;;  %vm1934_vm0 = vweird.f32 %v4795_v52  ;;  %v2219_v46 = vclz %v3528_v45 }
 0x4eb   :  { %v2042_v32 = vsel %vm2040_vm1, %v4143_v57, %v2041_v49  ;;  %v2456_v63 = vsel %vm2454_vm3, %v4143_v57, %v2041_v49  ;;  %v2093_v62 = vsel %vm2083_vm8, %v2079_v9, 1326507024  ;;  %vm2350_vm1 = vcmp.eq.s32.totalorder %v5020_v56, 0 }
 0x4ec   :  { %v2046_v15 = vsel %vm2039_vm4, %v2042_v32, %v2045_v31  ;;  %v2460_v38 = vsel %vm2453_vm2, %v2456_v63, %v2459_v53  ;;  %v5078_v21 = vmul.u32.u64.low %v2096_v39, %v2091_v22  ;;  %v5079_v0 = vmul.u32.u64.high %v2096_v39, %v2091_v22, %v5078_v21 }
 0x4ed   :  { %v5065_v20 = vsel %vm2037_vm7, nan, %v2046_v15  ;;  %v5069_v25 = vsel %vm2037_vm7, nan, %v2460_v38  ;;  %vm2353_vm3 = vcmp.eq.s32.totalorder %v5020_v56, 2  ;;  %v2207_v26 = vadd.s32 %v4962_v34, %v4958_v24 }
 0x4ee   :  { %v3529_v44 = vadd.s32 4294967294, %v2219_v46  ;;  %v2087_v59 = vsel %vm2081_vm10, %v2084_v61, %v2086_v28  ;;  %v2094_v43 = vsel %vm2082_vm9, %v2076_v48, %v2093_v62  ;;  %v2814_v19 = vmul.f32 %v5065_v20, %v5065_v20 }
 0x4ef   :  { %v4147_v33 = vpop.eup %4146  ;;  %v2826_v37 = vmul.f32 %v5069_v25, %v5065_v20  ;;  %v2095_v24 = vsel %vm2081_vm10, %v2092_v60, %v2094_v43  ;;  %v2818_v34 = vmul.f32 %v5069_v25, %v5069_v25  ;;  %v2106_v11 = vadd.s32 1, %v5079_v0 }
 0x4f0   :  { %v4149_v54 = vpop.eup %4148  ;;  %v1941_v2 = vxor.u32 2147483648, %v4147_v33  ;;  %vm3530_vm4 = vcmp.lt.s32.totalorder %v3529_v44, 0  ;;  %v5098_v10 = vmul.u32.u64.low %v2096_v39, %v2095_v24  ;;  %v5099_v1 = vmul.u32.u64.high %v2096_v39, %v2095_v24, %v5098_v10 }
 0x4f1   :  { %v1938_v12 = vxor.u32 2147483648, %v4149_v54  ;;  %v2222_v8 = vsel %vm3530_vm4, 0, %v3529_v44  ;;  %v2822_v57 = vsub.f32 %v2814_v19, %v2818_v34  ;;  %v2103_v36 = vmul.u32 %v2096_v39, %v2087_v59 }
 0x4f2   :  { %v1942_v14 = vsel %vm1940_vm11, %v1941_v2, %v4149_v54  ;;  %v2355_v29 = vsel %vm2353_vm3, %v1941_v2, %v4149_v54  ;;  %v2223_v41 = vsub.s32 32, %v2222_v8  ;;  %v2224_v7 = vshll.u32 %v5028_v18, %v2222_v8 }
 0x4f3   :  { %v1939_v51 = vsel %vm1937_vm12, %v4147_v33, %v1938_v12  ;;  %v2352_v48 = vsel %vm2350_vm1, %v4147_v33, %v1938_v12  ;;  %v2227_v40 = vsub.s32 4294967266, %v2222_v8  ;;  %vm2105_vm2 = vc.u32 %v5099_v1, %v5078_v21 }
 0x4f4   :  { %v1943_v13 = vsel %vm1936_vm14, %v1939_v51, %v1942_v14  ;;  %v2356_v23 = vsel %vm2349_vm15, %v2352_v48, %v2355_v29  ;;  %v2225_v42 = vshrl.u32 %v2207_v26, %v2223_v41  ;;  %v2107_v49 = vsel %vm2105_vm2, %v2106_v11, %v5079_v0 }
 0x4f5   :  { %v1944_v18 = vsel %vm1934_vm0, nan, %v1943_v13  ;;  %v5119_v4 = vsel %vm1934_vm0, nan, %v2356_v23  ;;  %v2228_v58 = vadd.s32 127, %v2227_v40  ;;  %v2108_v31 = vadd.s32 %v2107_v49, %v2103_v36 }
 0x4f6   :  { %v2226_v30 = vor.u32 %v2225_v42, %v2224_v7  ;;  %v2681_v3 = vpack.c.bf16 %v5069_v25, %v5119_v4  ;;  %v5126_v56 = vpack.c.bf16 %v5065_v20, %v1944_v18  ;;  %v2813_v27 = vmul.f32 %v1944_v18, %v1944_v18 }
 0x4f7   :  { %v2229_v16 = vshll.u32 %v2228_v58, 23  ;;  %v2817_v52 = vmul.f32 %v5119_v4, %v5119_v4  ;;  %v2825_v53 = vmul.f32 %v5119_v4, %v1944_v18  ;;  %v2830_v9 = vadd.f32 %v2826_v37, %v2826_v37 }
 0x4f8   :  { %v2233_v17 = vcvt.s32.f32 %v2226_v30  ;;  %3840 = vmatprep.subr.bf16.mxu0 %v2681_v3  ;;  %v2986_v63 = vmul.f32 %v2822_v57, %v5065_v20  ;;  %v3002_v45 = vmul.f32 %v2822_v57, %v5069_v25  ;;  %v2109_v22 = vadd.s32 536870912, %v2108_v31 }
 0x4f9   :  { %v2230_v47 = vor.u32 4788187, %v2229_v16  ;;  %3841 = vmatpush3.bf16.msra.mxu0 %v2681_v3  ;;  %v2821_v32 = vsub.f32 %v2813_v27, %v2817_v52  ;;  %v2829_v15 = vadd.f32 %v2825_v53, %v2825_v53  ;;  %v2990_v38 = vmul.f32 %v2830_v9, %v5069_v25 }
 0x4fa   :  { %v2998_v61 = vmul.f32 %v2830_v9, %v5065_v20  ;;  %v5139_v62 = vshrl.u32 %v2109_v22, 30  ;;  %v2237_v59 = vsub.s32 4, %v5012_v5  ;;  %vm2153_vm5 = vcmp.lt.s32.totalorder %v4803_v50, 0 }
 0x4fb   :  { %v2231_v39 = vand.u32 2147483647, %v2230_v47  ;;  %v5136_v46 = vpack.c.bf16 %v2822_v57, %v2821_v32  ;;  %v2985_v28 = vmul.f32 %v2821_v32, %v1944_v18  ;;  %v3001_v60 = vmul.f32 %v2821_v32, %v5119_v4 }
 0x4fc   :  { %v5141_v0 = vpack.c.bf16 %v2830_v9, %v2829_v15  ;;  %v2989_v26 = vmul.f32 %v2829_v15, %v5119_v4  ;;  %v2994_v44 = vsub.f32 %v2986_v63, %v2990_v38  ;;  %v2997_v43 = vmul.f32 %v2829_v15, %v1944_v18 }
 0x4fd   :  { %v2234_v33 = vmul.f32 %v2233_v17, %v2231_v39  ;;  %v3006_v19 = vadd.f32 %v3002_v45, %v2998_v61  ;;  %v2111_v37 = vshll.u32 %v5139_v62, 30  ;;  %vm2152_vm7 = vcmp.le.f32.partialorder %v2151_v6, 0.7853982 }
 0x4fe   :  { %v2993_v54 = vsub.f32 %v2985_v28, %v2989_v26  ;;  %v3162_v2 = vmul.f32 %v2994_v44, %v5065_v20  ;;  %v3005_v34 = vadd.f32 %v3001_v60, %v2997_v43  ;;  %v2238_v7 = vsel %vm2153_vm5, %v2237_v59, %v5012_v5 }
 0x4ff   :  { %v2235_v24 = vxor.u32 2147483648, %v2234_v33  ;;  %v3166_v12 = vmul.f32 %v3006_v19, %v5069_v25  ;;  %v3174_v8 = vmul.f32 %v3006_v19, %v5065_v20  ;;  %v2112_v10 = vsub.s32 %v2108_v31, %v2111_v37 }
 0x500   :  { %v5152_v14 = vpack.c.bf16 %v2994_v44, %v2993_v54  ;;  %v3161_v29 = vmul.f32 %v2993_v54, %v1944_v18  ;;  %v5155_v51 = vpack.c.bf16 %v3006_v19, %v3005_v34  ;;  %v3165_v48 = vmul.f32 %v3005_v34, %v5119_v4 }
 0x501   :  { %v2236_v41 = vsel %vm2153_vm5, %v2235_v24, %v2234_v33  ;;  %v2114_v11 = vsub.s32 0, %v2112_v10  ;;  %v3170_v20 = vsub.f32 %v3162_v2, %v3166_v12  ;;  %v3173_v23 = vmul.f32 %v3005_v34, %v1944_v18 }
 0x502   :  { %v2239_v40 = vsel %vm2152_vm7, %v4803_v50, %v2236_v41  ;;  %v3169_v13 = vsub.f32 %v3161_v29, %v3165_v48  ;;  %v2240_v42 = vsel %vm2152_vm7, 0, %v2238_v7  ;;  %v3177_v58 = vmul.f32 %v2993_v54, %v5119_v4 }
 0x503   :  { %4150 = vcosq.f32 %v2239_v40  ;;  %v3524_v6 = vmin.u32 %v2114_v11, %v2112_v10  ;;  %v3178_v5 = vmul.f32 %v2994_v44, %v5069_v25  ;;  %v2659_v30 = vadd.s32 3, %v2240_v42 }
 0x504   :  { %4152 = vsinq.f32 %v2239_v40  ;;  %v5159_v57 = vpack.c.bf16 %v3170_v20, %v3169_v13  ;;  %v3181_v3 = vadd.f32 %v3177_v58, %v3173_v23  ;;  %v2244_v27 = vand.u32 3, %v2240_v42 }
 0x505   :  { %v2116_v36 = vclz %v3524_v6  ;;  %v3182_v49 = vadd.f32 %v3178_v5, %v3174_v8  ;;  %v2660_v17 = vand.u32 3, %v2659_v30  ;;  %v2104_v31 = vadd.s32 %v5078_v21, %v5099_v1 }
 0x506   :  { %vm2246_vm6 = vcmp.eq.s32.totalorder %v2244_v27, 0  ;;  %vm2249_vm9 = vcmp.eq.s32.totalorder %v2244_v27, 2  ;;  %vm2245_vm12 = vcmp.lt.s32.totalorder %v2244_v27, 2  ;;  %vm2243_vm15 = vweird.f32 %v4803_v50 }
 0x507   :  { %v3525_v16 = vadd.s32 4294967294, %v2116_v36  ;;  %v5163_v52 = vpack.c.bf16 %v3182_v49, %v3181_v3  ;;  %vm2662_vm10 = vcmp.eq.s32.totalorder %v2660_v17, 0  ;;  %vm2665_vm11 = vcmp.eq.s32.totalorder %v2660_v17, 2 }
 0x508   :  { %vm2661_vm14 = vcmp.lt.s32.totalorder %v2660_v17, 2  ;;  %v2134_v24 = vsub.s32 4, %v5139_v62  ;;  %vm2050_vm0 = vcmp.lt.s32.totalorder %v4805_v55, 0  ;;  %vm2049_vm1 = vcmp.le.f32.partialorder %v2048_v35, 0.7853982 }
 0x509   :  { %vm3526_vm8 = vcmp.lt.s32.totalorder %v3525_v16, 0 }
 0x50a   :  { %v2119_v18 = vsel %vm3526_vm8, 0, %v3525_v16  ;;  %v2135_v48 = vsel %vm2050_vm0, %v2134_v24, %v5139_v62 }
 0x50b   :  { %v2120_v53 = vsub.s32 32, %v2119_v18  ;;  %v2124_v9 = vsub.s32 4294967266, %v2119_v18  ;;  %v2121_v25 = vshll.u32 %v2112_v10, %v2119_v18  ;;  %v2137_v23 = vsel %vm2049_vm1, 0, %v2135_v48  ;;  %v4119_v48 = vld [vmem:[#allocation7 + $0x48] sm:$0xff]  }
 0x50c   :  { %v2555_v58 = vadd.s32 3, %v2137_v23  ;;  %v2141_v36 = vand.u32 3, %v2137_v23 }
 0x50d   :  { %v4151_v47 = vpop.eup %4150  ;;  %v2122_v63 = vshrl.u32 %v2104_v31, %v2120_v53  ;;  %v2125_v45 = vadd.s32 127, %v2124_v9 }
 0x50e   :  { %v4153_v4 = vpop.eup %4152  ;;  %v2250_v32 = vxor.u32 2147483648, %v4151_v47  ;;  %v2556_v5 = vand.u32 3, %v2555_v58  ;;  %vm2146_vm3 = vcmp.eq.s32.totalorder %v2141_v36, 2  ;;  %vm2143_vm2 = vcmp.eq.s32.totalorder %v2141_v36, 0 }
 0x50f   :  { %v2247_v22 = vxor.u32 2147483648, %v4153_v4  ;;  %v2123_v61 = vor.u32 %v2122_v63, %v2121_v25  ;;  %v2126_v39 = vshll.u32 %v2125_v45, 23  ;;  %vm2142_vm7 = vcmp.lt.s32.totalorder %v2141_v36, 2  ;;  %v4111_v45 = vld [vmem:[#allocation7 + $0x18] sm:$0xff]  }
 0x510   :  { %v2251_v15 = vsel %vm2249_vm9, %v2250_v32, %v4153_v4  ;;  %v2667_v38 = vsel %vm2665_vm11, %v2250_v32, %v4153_v4  ;;  %vm2561_vm4 = vcmp.eq.s32.totalorder %v2556_v5, 2  ;;  %vm2558_vm5 = vcmp.eq.s32.totalorder %v2556_v5, 0 }
 0x511   :  { %v2248_v28 = vsel %vm2246_vm6, %v4151_v47, %v2247_v22  ;;  %v2664_v21 = vsel %vm2662_vm10, %v4151_v47, %v2247_v22  ;;  %v2127_v26 = vor.u32 4788187, %v2126_v39  ;;  %v2130_v59 = vcvt.s32.f32 %v2123_v61 }
 0x512   :  { %v2252_v1 = vsel %vm2245_vm12, %v2248_v28, %v2251_v15  ;;  %v2668_v60 = vsel %vm2661_vm14, %v2664_v21, %v2667_v38  ;;  %vm2557_vm8 = vcmp.lt.s32.totalorder %v2556_v5, 2  ;;  %vm2140_vm6 = vweird.f32 %v4805_v55  ;;  %v4112_v15 = vld [vmem:[#allocation7] sm:$0xff]  }
 0x513   :  { %v2253_v44 = vsel %vm2243_vm15, nan, %v2252_v1  ;;  %v5168_v33 = vsel %vm2243_vm15, nan, %v2668_v60  ;;  %v2128_v43 = vand.u32 2147483647, %v2127_v26  ;;  %vm4270_vm9 = vmmov 0  }
 0x514   :  { %v2816_v19 = vmul.f32 %v2253_v44, %v2253_v44  ;;  %v2820_v37 = vmul.f32 %v5168_v33, %v5168_v33  ;;  %v2828_v54 = vmul.f32 %v5168_v33, %v2253_v44 }
 0x515   :  { %v2131_v2 = vmul.f32 %v2130_v59, %v2128_v43 }
 0x516   :  { %v2824_v34 = vsub.f32 %v2816_v19, %v2820_v37  ;;  %v2832_v12 = vadd.f32 %v2828_v54, %v2828_v54 }
 0x517   :  { %v2132_v50 = vxor.u32 2147483648, %v2131_v2 }
 0x518   :  { %v2988_v8 = vmul.f32 %v2824_v34, %v2253_v44  ;;  %v2992_v10 = vmul.f32 %v2832_v12, %v5168_v33  ;;  %v3000_v29 = vmul.f32 %v2832_v12, %v2253_v44  ;;  %v3004_v41 = vmul.f32 %v2824_v34, %v5168_v33 }
 0x519   :  { %v2133_v7 = vsel %vm2050_vm0, %v2132_v50, %v2131_v2 }
 0x51a   :  { %v2996_v40 = vsub.f32 %v2988_v8, %v2992_v10  ;;  %v2136_v11 = vsel %vm2049_vm1, %v4805_v55, %v2133_v7  ;;  %v3008_v13 = vadd.f32 %v3004_v41, %v3000_v29  ;;  %v4113_v8 = vld [vmem:[#allocation7 + $0x8] sm:$0xff]   ;;  %v4114_v10 = vld [vmem:[#allocation7 + $0x20] sm:$0xff]   ;;  %v4116_v41 = vld [vmem:[#allocation7 + $0x30] sm:$0xff]  }
 0x51b   :  { %4154 = vcosq.f32 %v2136_v11  ;;  %v4115_v29 = vld [vmem:[#allocation7 + $0x28] sm:$0xff]   ;;  %v4117_v7 = vld [vmem:[#allocation7 + $0x38] sm:$0xff]  }
 0x51c   :  { %v3180_v20 = vmul.f32 %v2996_v40, %v5168_v33  ;;  %4156 = vsinq.f32 %v2136_v11  ;;  %v3176_v42 = vmul.f32 %v3008_v13, %v2253_v44  ;;  %v3164_v61 = vmul.f32 %v2996_v40, %v2253_v44  ;;  %v4123_v11 = vld [vmem:[#allocation7 + $0x68] sm:$0xff]  }
 0x51d   :  { %v3168_v21 = vmul.f32 %v3008_v13, %v5168_v33 }
 0x51e   :  { %v3184_v6 = vadd.f32 %v3180_v20, %v3176_v42  ;;  %v4271_v20 = vmov 0.0  }
 0x51f   :  { %3912 = vmatprep.mubr.msk.f32.mxu1 %vm4270_vm9, %v4271_v20 }
 0x525   :  { %v4155_v30 = vpop.eup %4154 }
 0x526   :  { %v4157_v3 = vpop.eup %4156  ;;  %v2147_v35 = vxor.u32 2147483648, %v4155_v30 }
 0x527   :  { %v2144_v16 = vxor.u32 2147483648, %v4157_v3 }
 0x528   :  { %v2148_v62 = vsel %vm2146_vm3, %v2147_v35, %v4157_v3  ;;  %v2563_v49 = vsel %vm2561_vm4, %v2147_v35, %v4157_v3 }
 0x529   :  { %v2145_v27 = vsel %vm2143_vm2, %v4155_v30, %v2144_v16  ;;  %v2560_v17 = vsel %vm2558_vm5, %v4155_v30, %v2144_v16 }
 0x52a   :  { %v2149_v18 = vsel %vm2142_vm7, %v2145_v27, %v2148_v62  ;;  %v2564_v31 = vsel %vm2557_vm8, %v2560_v17, %v2563_v49 }
 0x52b   :  { %v2150_v53 = vsel %vm2140_vm6, nan, %v2149_v18  ;;  %v2565_v9 = vsel %vm2140_vm6, nan, %v2564_v31 }
 0x52c   :  { %v2682_v47 = vpack.c.bf16 %v5168_v33, %v2565_v9  ;;  %v2675_v4 = vpack.c.bf16 %v2253_v44, %v2150_v53  ;;  %v2815_v32 = vmul.f32 %v2150_v53, %v2150_v53  ;;  %v2819_v25 = vmul.f32 %v2565_v9, %v2565_v9 }
 0x52d   :  { %v2827_v63 = vmul.f32 %v2565_v9, %v2150_v53  ;;  %v3172_v44 = vsub.f32 %v3164_v61, %v3168_v21 }
 0x52e   :  { %3842 = vmatprep.subr.bf16.mxu0 %v2682_v47  ;;  %v2823_v22 = vsub.f32 %v2815_v32, %v2819_v25 }
 0x52f   :  { %3843 = vmatpush3.bf16.msra.mxu0 %v2682_v47  ;;  %v2831_v38 = vadd.f32 %v2827_v63, %v2827_v63 }
 0x530   :  { %3848 = vmatprep.subr.bf16.mxu0 %v5126_v56  ;;  %v2839_v55 = vpack.c.bf16 %v2824_v34, %v2823_v22  ;;  %v2987_v39 = vmul.f32 %v2823_v22, %v2150_v53  ;;  %v3003_v28 = vmul.f32 %v2823_v22, %v2565_v9 }
 0x531   :  { %v2915_v1 = vpack.c.bf16 %v2832_v12, %v2831_v38  ;;  %v2991_v60 = vmul.f32 %v2831_v38, %v2565_v9  ;;  %v2999_v26 = vmul.f32 %v2831_v38, %v2150_v53 }
 0x532   :  { %3845 = vmatmul.mubr.msk.bf16.vlgmr.msra.gmra.mrb[8].mxu0 %vm1112_vm13, %v4111_v45 }
 0x533   :  { %3849 = vmatpush3.bf16.msra.mxu0 %v5126_v56  ;;  %3852 = vmatprep.mubr.msk.bf16.mxu0 %vm1112_vm13, %v4112_v15  ;;  %v2995_v59 = vsub.f32 %v2987_v39, %v2991_v60  ;;  %v3007_v43 = vadd.f32 %v3003_v28, %v2999_v26 }
 0x534   :  { %3850 = vmatprep.subr.bf16.mxu0 %v2675_v4 }
 0x535   :  { %v3015_v19 = vpack.c.bf16 %v2996_v40, %v2995_v59  ;;  %v3091_v37 = vpack.c.bf16 %v3008_v13, %v3007_v43  ;;  %v3163_v54 = vmul.f32 %v2995_v59, %v2150_v53  ;;  %v3167_v2 = vmul.f32 %v3007_v43, %v2565_v9  ;;  %v4121_v40 = vld [vmem:[#allocation7 + $0x58] sm:$0xff]  }
 0x536   :  { %v3175_v24 = vmul.f32 %v3007_v43, %v2150_v53  ;;  %v3179_v34 = vmul.f32 %v2995_v59, %v2565_v9  ;;  %v4125_v13 = vld [vmem:[#allocation7 + $0x78] sm:$0xff]  }
 0x537   :  { %3851 = vmatpush3.bf16.msra.mxu0 %v2675_v4  ;;  %v3171_v33 = vsub.f32 %v3163_v54, %v3167_v2 }
 0x538   :  { %3856 = vmatprep.subr.bf16.mxu0 %v5136_v46  ;;  %v3183_v12 = vadd.f32 %v3179_v34, %v3175_v24 }
 0x539   :  { %v3191_v50 = vpack.c.bf16 %v3172_v44, %v3171_v33 }
 0x53a   :  { %v3267_v56 = vpack.c.bf16 %v3184_v6, %v3183_v12 }
 0x53e   :  { %3853 = vmatmul.mubr.msk.bf16.vlgmr.msra.gmra.mrb[8].mxu0 %vm1112_vm13, %v4113_v8 }
 0x53f   :  { %3857 = vmatpush3.bf16.msra.mxu0 %v5136_v46  ;;  %3860 = vmatprep.mubr.msk.bf16.mxu0 %vm1112_vm13, %v4114_v10  ;;  %v4118_v46 = vld [vmem:[#allocation7 + $0x40] sm:$0xff]  }
 0x540   :  { %3858 = vmatprep.subr.bf16.mxu0 %v2839_v55 }
 0x543   :  { %3859 = vmatpush3.bf16.msra.mxu0 %v2839_v55 }
 0x544   :  { %3864 = vmatprep.subr.bf16.mxu0 %v5141_v0 }
 0x54a   :  { %3861 = vmatmul.mubr.msk.bf16.vlgmr.msra.gmra.mrb[8].mxu0 %vm1112_vm13, %v4115_v29 }
 0x54b   :  { %3865 = vmatpush3.bf16.msra.mxu0 %v5141_v0  ;;  %3868 = vmatprep.mubr.msk.bf16.mxu0 %vm1112_vm13, %v4116_v41  ;;  %v4120_v0 = vld [vmem:[#allocation7 + $0x50] sm:$0xff]  }
 0x54c   :  { %3866 = vmatprep.subr.bf16.mxu0 %v2915_v1 }
 0x54f   :  { %3867 = vmatpush3.bf16.msra.mxu0 %v2915_v1 }
 0x550   :  { %3872 = vmatprep.subr.bf16.mxu0 %v5152_v14 }
 0x556   :  { %3869 = vmatmul.mubr.msk.bf16.vlgmr.msra.gmra.mrb[8].mxu0 %vm1112_vm13, %v4117_v7 }
 0x557   :  { %3873 = vmatpush3.bf16.msra.mxu0 %v5152_v14  ;;  %3876 = vmatprep.mubr.msk.bf16.mxu0 %vm1112_vm13, %v4118_v46  ;;  %v4122_v14 = vld [vmem:[#allocation7 + $0x60] sm:$0xff]  }
 0x558   :  { %3874 = vmatprep.subr.bf16.mxu0 %v3015_v19 }
 0x55b   :  { %3875 = vmatpush3.bf16.msra.mxu0 %v3015_v19 }
 0x55c   :  { %3880 = vmatprep.subr.bf16.mxu0 %v5155_v51 }
 0x562   :  { %3877 = vmatmul.mubr.msk.bf16.vlgmr.msra.gmra.mrb[8].mxu0 %vm1112_vm13, %v4119_v48 }
 0x563   :  { %3881 = vmatpush3.bf16.msra.mxu0 %v5155_v51  ;;  %3884 = vmatprep.mubr.msk.bf16.mxu0 %vm1112_vm13, %v4120_v0  ;;  %v4124_v51 = vld [vmem:[#allocation7 + $0x70] sm:$0xff]  }
 0x564   :  { %3882 = vmatprep.subr.bf16.mxu0 %v3091_v37 }
 0x567   :  { %3883 = vmatpush3.bf16.msra.mxu0 %v3091_v37 }
 0x568   :  { %3888 = vmatprep.subr.bf16.mxu0 %v5159_v57 }
 0x56e   :  { %3885 = vmatmul.mubr.msk.bf16.vlgmr.msra.gmra.mrb[8].mxu0 %vm1112_vm13, %v4121_v40 }
 0x56f   :  { %3889 = vmatpush3.bf16.msra.mxu0 %v5159_v57  ;;  %3892 = vmatprep.mubr.msk.bf16.mxu0 %vm1112_vm13, %v4122_v14  ;;  %v4269_v57 = vmov 0.0|0.0  }
 0x570   :  { %3890 = vmatprep.subr.bf16.mxu0 %v3191_v50  ;;  %3983 = vmatprep.subr.bf16.mxu1 %v4269_v57 }
 0x573   :  { %3891 = vmatpush3.bf16.msra.mxu0 %v3191_v50 }
 0x574   :  { %3896 = vmatprep.subr.bf16.mxu0 %v5163_v52 }
 0x57a   :  { %3893 = vmatmul.mubr.msk.bf16.vlgmr.msra.gmra.mrb[8].mxu0 %vm1112_vm13, %v4123_v11 }
 0x57b   :  { %3897 = vmatpush3.bf16.msra.mxu0 %v5163_v52  ;;  %3900 = vmatprep.mubr.msk.bf16.mxu0 %vm1112_vm13, %v4124_v51  ;;  %v3337_v52 = vld [vmem:[%s5235_s5] sm:$0xff]  ;;  %s4272_s5 = smov [#allocation8]  }
 0x57c   :  { %3898 = vmatprep.subr.bf16.mxu0 %v3267_v56  ;;  %s3437_s21 = sshll.u32 %s4272_s5, 4  ;;  %s3438_s21 = int_to_ptr.vmem [resolvable:$true] %s3437_s21 }
 0x57d   :  { %s4228_s22 = scalar_lea.vmem %s3438_s21, 128  ;;  %p4233_p11 = scmp.lt.s32.totalorder %s3438_s21, %s3438_s21 }
 0x57e   :  { %p4229_p10 = scmp.ne.s32.totalorder %s3438_s21, %s4228_s22  ;;  %p4234_p12 = scmp.lt.s32.totalorder %s4228_s22, %s4228_s22 }
 0x57f   :  { %3899 = vmatpush3.bf16.msra.mxu0 %v3267_v56 }
 0x580   :  { %p4235_p13 = por %p4234_p12, %p4233_p11 }
 0x582   :  { %p4236_p0 = pnand %p4235_p13, %p4229_p10 }
 0x586   :  { %3901 = vmatmul.mubr.msk.bf16.vlgmr.msra.gmra.mrb[8].mxu0 %vm1112_vm13, %v4125_v13 }
 0x659   :  { %v3902_v23 = vpop.f32.mrb[8].mxu0 }
 0x65a   :  { %v3318_v42 = vpop.f32.mrb[9].mxu0 }
 0x65b   :  { %v3903_v6 = vpop.f32.mrb[10].mxu0 }
 0x65c   :  { %v3987_v58 = vpack.c.bf16 %v3903_v6, %v3902_v23  ;;  %v3321_v36 = vpop.f32.mrb[11].mxu0 }
 0x65d   :  { %v3984_v5 = vpack.c.bf16 %v3321_v36, %v3318_v42 }
 0x65f   :  { %3985 = vmatpush3.bf16.msra.mxu1 %v3984_v5 }
 0x660   :  { %3986 = vmatprep.subr.bf16.mxu1 %v4269_v57 }
 0x663   :  { %3988 = vmatpush3.bf16.msra.mxu1 %v3987_v58 }
 0x666   :  { %3913 = vmatmul.mubr.msk.f32.vlgmr.msra.gmra.mrb[2].mxu1 %vm1112_vm13, %v3337_v52 }
 0x739   :  { %v3407_v30 = vpop.f32.mrb[2].mxu1 }
 0x73a   :  { %v3411_v3 = vrot.slane %v3407_v30, 4  ;;  %v3914_v35 = vpop.f32.mrb[3].mxu1 }
 0x73c   :  { %v3412_v16 = vmax.f32 %v3407_v30, %v3411_v3 }
 0x73e   :  { %v3413_v62 = vrot.slane %v3412_v16, 2 }
 0x740   :  { %v3414_v49 = vmax.f32 %v3412_v16, %v3413_v62 }
 0x742   :  { %v3415_v27 = vrot.slane %v3414_v49, 1 }
 0x744   :  { %v3416_v17 = vmax.f32 %v3414_v49, %v3415_v27 }
 0x746   :  { %v3417_v18 = vsub.f32 %v3407_v30, %v3416_v17 }
 0x748   :  { %v3418_v31 = vmul.f32 1.442695, %v3417_v18 }
 0x74a   :  { %4158 = vpow2.f32 %v3418_v31 }
 0x754   :  { %v4159_v53 = vpop.eup %4158 }
 0x755   :  { %v3420_v9 = vrot.slane %v4159_v53, 4 }
 0x757   :  { %v3421_v47 = vadd.f32 %v4159_v53, %v3420_v9 }
 0x759   :  { %v3422_v4 = vrot.slane %v3421_v47, 2 }
 0x75b   :  { %v3423_v32 = vadd.f32 %v3422_v4, %v3421_v47 }
 0x75d   :  { %v3424_v25 = vrot.slane %v3423_v32, 1 }
 0x75f   :  { %v3425_v63 = vadd.f32 %v3424_v25, %v3423_v32 }
 0x761   :  { %4160 = vlog2.f32 %v3425_v63 }
 0x76b   :  { %v4161_v45 = vpop.eup %4160 }
 0x76c   :  { %v3427_v22 = vmul.f32 0.6931472, %v4161_v45 }
 0x76e   :  { %v3428_v15 = vadd.f32 %v3427_v22, %v3416_v17 }
 0x770   :  { %v3429_v38 = vsub.f32 %v3407_v30, %v3428_v15 }
 0x772   :  { %3430 = vst [vmem:[#allocation8] sm:$0xff] %v3429_v38 }
 0x773   :  { %4239 = shalt.err (!%p4236_p0)
}
 0x774   :  { %s4240_s25 = scalar_lea.hbm %s5236_s6, 128 }
 0x775   :  { %p4241_p1 = scmp.ne.s32.totalorder %s5236_s6, %s4240_s25  ;;  %p4244_p2 = scmp.lt.u32.totalorder %s4240_s25, %s5236_s6 }
 0x777   :  { %p4246_p3 = pnand %p4244_p2, %p4241_p1 }
 0x779   :  { %4249 = shalt.err (!%p4246_p3)
}
 0x77a   :  { %3440 = dma.vmem_to_hbm [thread:$0]  %s3438_s21, 128, %s5236_s6, [#allocation4]  }
 0x77b   :  { %4254 = dma.done.wait [#allocation4], 128  }
 0x77c   :  { %4255 = vsyncadd [#allocation4], 4294967168 }
 0x77d   :  { %3444 = vsyncpa [#allocation3], 1 }
 0x77e   :  { %3445 = vsyncpa [#allocation6], 1 }
 0x77f   :  { %3446 = vsyncpa [#allocation4], 1 }

</bundles_post_ra>
